<compile_context>
chip_gen: v7x
topology: tpu7x:2x2x1
jax: 0.10.0
libtpu: 0.0.40
codegen_flags: <defaults>
</compile_context>

<pallas_src>
import functools

import jax
import jax.numpy as jnp
import numpy as np
from jax.experimental import pallas as pl
from jax.experimental.pallas import tpu as pltpu

_VMEM_LIMIT = 16 * 1024 * 1024


def _celu(v):
    # CELU(alpha=1): max(0, x) + min(0, exp(x) - 1)
    return jnp.where(v > 0, v, jnp.expm1(v))


# ---------------------------------------------------------------------------
# Kernel 1: batch-independent sigmatrix chains (run once per weight update).
# ---------------------------------------------------------------------------
def sigmatrix_kernel(
    d1w0, d1w1, d1w2, d1w3, d1w4,
    d2w0, d2w1, d2w2, d2w3, d2w4,
    sig1_ref, sig2_ref,
):
    dot = functools.partial(jnp.dot, preferred_element_type=jnp.float32)

    def chain(ws):
        m = ws[0][...].astype(jnp.float32)
        for w in ws[1:]:
            m = dot(m, w[...].astype(jnp.float32))
        return jnp.maximum(m, 0.0)  # F.relu

    sig1_ref[...] = chain([d1w0, d1w1, d1w2, d1w3, d1w4])
    sig2_ref[...] = chain([d2w0, d2w1, d2w2, d2w3, d2w4])


def compute_sigmatrices(params):
    out_dim = params["dec1_w"][0].shape[0]
    in1 = params["dec1_w"][4].shape[1]
    in2 = params["dec2_w"][4].shape[1]
    args = list(params["dec1_w"]) + list(params["dec2_w"])
    vmem = pltpu.MemorySpace.VMEM
    fn = pl.pallas_call(
        sigmatrix_kernel,
        out_shape=(
            jax.ShapeDtypeStruct((out_dim, in1), jnp.float32),
            jax.ShapeDtypeStruct((out_dim, in2), jnp.float32),
        ),
        in_specs=[pl.BlockSpec(memory_space=vmem) for _ in args],
        out_specs=(pl.BlockSpec(memory_space=vmem),
                   pl.BlockSpec(memory_space=vmem)),
        compiler_params=pltpu.CompilerParams(vmem_limit_bytes=_VMEM_LIMIT),
    )
    return fn(*args)


# ---------------------------------------------------------------------------
# Kernel 2: per-batch hot path (encoder + fused s1/s2 + reconstructions).
# ---------------------------------------------------------------------------
def autoencoder_kernel(
    x_ref,
    ew0, eb0, ew1, eb1, ew2, eb2, ew3, eb3, ew4, eb4,
    scat_ref, sig1_ref, sig2_ref,
    xr1_ref, xr2_ref, z1_ref, z2_ref,
):
    dot = functools.partial(jnp.dot, preferred_element_type=jnp.float32)

    def dense(h, w_ref, b_ref):
        # bf16 x bf16 on the MXU, f32 accumulate, f32 bias add on the VPU.
        return dot(h.astype(jnp.bfloat16), w_ref[...]) + b_ref[...]

    # ---- encoder: (Dropout, Linear, CELU) x4 -> Linear --------------------
    # TODO(synk): nn.Dropout is stochastic in train mode; implemented as
    # identity (eval/inference semantics) for a deterministic kernel.
    h = x_ref[...]
    h = _celu(dense(h, ew0, eb0))
    h = _celu(dense(h, ew1, eb1))
    h = _celu(dense(h, ew2, eb2))
    h = _celu(dense(h, ew3, eb3))
    p = dense(h, ew4, eb4)                                 # (TB, out_dim) f32

    # ---- fused s1/s2 projection (single N=2*out_dim matmul) ---------------
    z = dot(p.astype(jnp.bfloat16), scat_ref[...])         # (TB, 2*out_dim) f32
    out_dim = scat_ref.shape[0]
    z1 = z[:, :out_dim]
    z2 = z[:, out_dim:]
    z1_ref[...] = z1
    z2_ref[...] = z2

    # state == 'train' in the reference forward -> no relu / refraction on z.

    # ---- reconstructions (sig1/sig2 precomputed f32, lane-dense outputs) --
    xr1_ref[...] = dot(z1, sig1_ref[...])
    xr2_ref[...] = dot(z2, sig2_ref[...])


def autoencoder_forward(x, params, *, block_b=8):
    """Full forward: returns (x_recon1, x_recon2, z1, z2, sigmatrix1, sigmatrix2)."""
    B = x.shape[0]
    input_dim = params["enc_w"][0].shape[0]
    out_dim = params["s_cat"].shape[0]

    # Batch-independent piece; cacheable across batches (weights fixed).
    sig1, sig2 = compute_sigmatrices(params)
    input1_dim = sig1.shape[1]
    input2_dim = sig2.shape[1]

    TB = min(block_b, B)
    assert B % TB == 0, "batch must be a multiple of the batch tile"
    grid = (B // TB,)

    def resident_spec(shape):
        # Whole-array block, constant index_map -> stays resident in VMEM
        # across the (parallel) batch grid axis.
        return pl.BlockSpec(shape, lambda i: (0, 0))

    in_specs = [pl.BlockSpec((TB, input_dim), lambda i: (i, 0))]
    args = [x]
    for w, b in zip(params["enc_w"], params["enc_b"]):
        in_specs += [resident_spec(w.shape), resident_spec(b.shape)]
        args += [w, b]
    in_specs += [resident_spec(params["s_cat"].shape),
                 resident_spec(sig1.shape), resident_spec(sig2.shape)]
    args += [params["s_cat"], sig1, sig2]

    out_shape = (
        jax.ShapeDtypeStruct((B, input1_dim), jnp.float32),   # x_recon1
        jax.ShapeDtypeStruct((B, input2_dim), jnp.float32),   # x_recon2
        jax.ShapeDtypeStruct((B, out_dim), jnp.float32),      # z1
        jax.ShapeDtypeStruct((B, out_dim), jnp.float32),      # z2
    )
    out_specs = (
        pl.BlockSpec((TB, input1_dim), lambda i: (i, 0)),
        pl.BlockSpec((TB, input2_dim), lambda i: (i, 0)),
        pl.BlockSpec((TB, out_dim), lambda i: (i, 0)),
        pl.BlockSpec((TB, out_dim), lambda i: (i, 0)),
    )

    fn = pl.pallas_call(
        autoencoder_kernel,
        out_shape=out_shape,
        grid=grid,
        in_specs=in_specs,
        out_specs=out_specs,
        compiler_params=pltpu.CompilerParams(
            dimension_semantics=("parallel",),
            vmem_limit_bytes=_VMEM_LIMIT,
        ),
    )
    xr1, xr2, z1, z2 = fn(*args)
    return xr1, xr2, z1, z2, sig1, sig2


# ---------------------------------------------------------------------------
# Parameter construction (deterministic, PyTorch nn.Linear-style init),
# stored directly in kernel layout: (in, out) bf16 weights, (1, out) f32 bias.
# ---------------------------------------------------------------------------
def _linear_params(key, fan_in, fan_out, bias=True):
    bound = 1.0 / float(np.sqrt(fan_in))
    kw, kb = jax.random.split(key)
    w = jax.random.uniform(kw, (fan_out, fan_in), jnp.float32, -bound, bound)
    if bias:
        b = jax.random.uniform(kb, (fan_out,), jnp.float32, -bound, bound)
        return w, b
    return w, None


def init_params(key, input_dim, output_dim, input1_dim, input2_dim):
    enc_dims = [input_dim, 512, 256, 128, 64, output_dim]
    dec1_dims = [output_dim, 64, 128, 256, 512, input1_dim]
    dec2_dims = [output_dim, 64, 128, 256, 512, input2_dim]

    keys = jax.random.split(key, 17)
    ki = iter(keys)

    params = {"enc_w": [], "enc_b": [], "dec1_w": [], "dec2_w": []}
    for i in range(5):
        w, b = _linear_params(next(ki), enc_dims[i], enc_dims[i + 1], bias=True)
        params["enc_w"].append(jnp.asarray(w.T, jnp.bfloat16))   # (in, out)
        params["enc_b"].append(b.reshape(1, -1))                 # (1, out) f32
    s1, _ = _linear_params(next(ki), output_dim, output_dim, bias=False)
    s2, _ = _linear_params(next(ki), output_dim, output_dim, bias=False)
    params["s_cat"] = jnp.asarray(
        jnp.concatenate([s1.T, s2.T], axis=1), jnp.bfloat16)     # (out, 2*out)
    for i in range(5):
        w, _ = _linear_params(next(ki), dec1_dims[i], dec1_dims[i + 1], bias=False)
        params["dec1_w"].append(jnp.asarray(w.T, jnp.bfloat16))  # (in, out)
    for i in range(5):
        w, _ = _linear_params(next(ki), dec2_dims[i], dec2_dims[i + 1], bias=False)
        params["dec2_w"].append(jnp.asarray(w.T, jnp.bfloat16))
    return params


# ---------------------------------------------------------------------------
# Pure-JAX reference (mirror of the PyTorch forward, eval-mode dropout).
# Uses the same bf16-stored weights (upcast to f32) so the comparison only
# measures kernel numerics, not the storage-dtype choice.
# ---------------------------------------------------------------------------
def autoencoder_ref(x, params):
    f32 = lambda a: a.astype(jnp.float32)

    def celu(v):
        return jnp.where(v > 0, v, jnp.expm1(v))

    h = x
    for i in range(4):
        h = celu(h @ f32(params["enc_w"][i]) + params["enc_b"][i])
    p = h @ f32(params["enc_w"][4]) + params["enc_b"][4]

    z = p @ f32(params["s_cat"])
    out_dim = params["s_cat"].shape[0]
    z1, z2 = z[:, :out_dim], z[:, out_dim:]

    def sigmatrix(ws):
        m = f32(ws[0])
        for w in ws[1:]:
            m = m @ f32(w)
        return jnp.maximum(m, 0.0)

    sig1 = sigmatrix(params["dec1_w"])
    sig2 = sigmatrix(params["dec2_w"])
    return z1 @ sig1, z2 @ sig2, z1, z2, sig1, sig2


if __name__ == "__main__":
    # Small, module-consistent shapes.
    batch = 16
    input_dim = 256
    output_dim = 16
    input1_dim = 256
    input2_dim = 128

    key = jax.random.PRNGKey(0)
    kx, kp = jax.random.split(key)
    x = jax.random.normal(kx, (batch, input_dim), jnp.float32)
    params = init_params(kp, input_dim, output_dim, input1_dim, input2_dim)

    outs = autoencoder_forward(x, params, block_b=8)
    outs = jax.block_until_ready(outs)

    refs = autoencoder_ref(x, params)
    names = ["x_recon1", "x_recon2", "z1", "z2", "sigmatrix1", "sigmatrix2"]
    for name, o, r in zip(names, outs, refs):
        np.testing.assert_allclose(np.asarray(o), np.asarray(r),
                                   rtol=3e-2, atol=3e-3, err_msg=name)

    print("KERNEL_OK")
</pallas_src>

<mosaic_0001>
module attributes {stable_mosaic.version = 11 : i64} {
  func.func @sigmatrix_kernel(%arg0: memref<16x64xbf16, #tpu.memory_space<vmem>>, %arg1: memref<64x128xbf16, #tpu.memory_space<vmem>>, %arg2: memref<128x256xbf16, #tpu.memory_space<vmem>>, %arg3: memref<256x512xbf16, #tpu.memory_space<vmem>>, %arg4: memref<512x256xbf16, #tpu.memory_space<vmem>>, %arg5: memref<16x64xbf16, #tpu.memory_space<vmem>>, %arg6: memref<64x128xbf16, #tpu.memory_space<vmem>>, %arg7: memref<128x256xbf16, #tpu.memory_space<vmem>>, %arg8: memref<256x512xbf16, #tpu.memory_space<vmem>>, %arg9: memref<512x128xbf16, #tpu.memory_space<vmem>>, %arg10: memref<16x256xf32, #tpu.memory_space<vmem>>, %arg11: memref<16x128xf32, #tpu.memory_space<vmem>>) attributes {dimension_semantics = [], scalar_prefetch = 0 : i64, scratch_operands = 0 : i64, tpu.core_type = #tpu.core_type<tc>} {
    %c0 = arith.constant 0 : index
    %c0_0 = arith.constant 0 : index
    %0 = vector.load %arg0[%c0, %c0_0] : memref<16x64xbf16, #tpu.memory_space<vmem>>, vector<16x64xbf16>
    %1 = arith.extf %0 : vector<16x64xbf16> to vector<16x64xf32>
    %c0_1 = arith.constant 0 : index
    %c0_2 = arith.constant 0 : index
    %2 = vector.load %arg1[%c0_1, %c0_2] : memref<64x128xbf16, #tpu.memory_space<vmem>>, vector<64x128xbf16>
    %3 = arith.extf %2 : vector<64x128xbf16> to vector<64x128xf32>
    %cst = arith.constant dense<0.000000e+00> : vector<16x128xf32>
    %4 = tpu.matmul %1, %3, %cst {dimension_numbers = #tpu.dot_dimension_numbers<[1], [0], [0], [1], [0, 0, 1, 1], [], []>} : vector<16x64xf32>, vector<64x128xf32>, vector<16x128xf32> -> vector<16x128xf32>
    %c0_3 = arith.constant 0 : index
    %c0_4 = arith.constant 0 : index
    %5 = vector.load %arg2[%c0_3, %c0_4] : memref<128x256xbf16, #tpu.memory_space<vmem>>, vector<128x256xbf16>
    %6 = arith.extf %5 : vector<128x256xbf16> to vector<128x256xf32>
    %cst_5 = arith.constant dense<0.000000e+00> : vector<16x256xf32>
    %7 = tpu.matmul %4, %6, %cst_5 {dimension_numbers = #tpu.dot_dimension_numbers<[1], [0], [0], [1], [0, 0, 1, 1], [], []>} : vector<16x128xf32>, vector<128x256xf32>, vector<16x256xf32> -> vector<16x256xf32>
    %c0_6 = arith.constant 0 : index
    %c0_7 = arith.constant 0 : index
    %8 = vector.load %arg3[%c0_6, %c0_7] : memref<256x512xbf16, #tpu.memory_space<vmem>>, vector<256x512xbf16>
    %9 = arith.extf %8 : vector<256x512xbf16> to vector<256x512xf32>
    %cst_8 = arith.constant dense<0.000000e+00> : vector<16x512xf32>
    %10 = tpu.matmul %7, %9, %cst_8 {dimension_numbers = #tpu.dot_dimension_numbers<[1], [0], [0], [1], [0, 0, 1, 1], [], []>} : vector<16x256xf32>, vector<256x512xf32>, vector<16x512xf32> -> vector<16x512xf32>
    %c0_9 = arith.constant 0 : index
    %c0_10 = arith.constant 0 : index
    %11 = vector.load %arg4[%c0_9, %c0_10] : memref<512x256xbf16, #tpu.memory_space<vmem>>, vector<512x256xbf16>
    %12 = arith.extf %11 : vector<512x256xbf16> to vector<512x256xf32>
    %cst_11 = arith.constant dense<0.000000e+00> : vector<16x256xf32>
    %13 = tpu.matmul %10, %12, %cst_11 {dimension_numbers = #tpu.dot_dimension_numbers<[1], [0], [0], [1], [0, 0, 1, 1], [], []>} : vector<16x512xf32>, vector<512x256xf32>, vector<16x256xf32> -> vector<16x256xf32>
    %cst_12 = arith.constant 0.000000e+00 : f32
    %14 = vector.broadcast %cst_12 : f32 to vector<16x256xf32>
    %15 = arith.maximumf %13, %14 : vector<16x256xf32>
    %c0_13 = arith.constant 0 : index
    %c0_14 = arith.constant 0 : index
    %16 = vector.load %arg10[%c0_13, %c0_14] : memref<16x256xf32, #tpu.memory_space<vmem>>, vector<16x256xf32>
    tpu.vector_store %arg10[%c0_13, %c0_14], %15 {strides = array<i32>} : memref<16x256xf32, #tpu.memory_space<vmem>>, vector<16x256xf32>,
    %c0_15 = arith.constant 0 : index
    %c0_16 = arith.constant 0 : index
    %17 = vector.load %arg5[%c0_15, %c0_16] : memref<16x64xbf16, #tpu.memory_space<vmem>>, vector<16x64xbf16>
    %18 = arith.extf %17 : vector<16x64xbf16> to vector<16x64xf32>
    %c0_17 = arith.constant 0 : index
    %c0_18 = arith.constant 0 : index
    %19 = vector.load %arg6[%c0_17, %c0_18] : memref<64x128xbf16, #tpu.memory_space<vmem>>, vector<64x128xbf16>
    %20 = arith.extf %19 : vector<64x128xbf16> to vector<64x128xf32>
    %cst_19 = arith.constant dense<0.000000e+00> : vector<16x128xf32>
    %21 = tpu.matmul %18, %20, %cst_19 {dimension_numbers = #tpu.dot_dimension_numbers<[1], [0], [0], [1], [0, 0, 1, 1], [], []>} : vector<16x64xf32>, vector<64x128xf32>, vector<16x128xf32> -> vector<16x128xf32>
    %c0_20 = arith.constant 0 : index
    %c0_21 = arith.constant 0 : index
    %22 = vector.load %arg7[%c0_20, %c0_21] : memref<128x256xbf16, #tpu.memory_space<vmem>>, vector<128x256xbf16>
    %23 = arith.extf %22 : vector<128x256xbf16> to vector<128x256xf32>
    %cst_22 = arith.constant dense<0.000000e+00> : vector<16x256xf32>
    %24 = tpu.matmul %21, %23, %cst_22 {dimension_numbers = #tpu.dot_dimension_numbers<[1], [0], [0], [1], [0, 0, 1, 1], [], []>} : vector<16x128xf32>, vector<128x256xf32>, vector<16x256xf32> -> vector<16x256xf32>
    %c0_23 = arith.constant 0 : index
    %c0_24 = arith.constant 0 : index
    %25 = vector.load %arg8[%c0_23, %c0_24] : memref<256x512xbf16, #tpu.memory_space<vmem>>, vector<256x512xbf16>
    %26 = arith.extf %25 : vector<256x512xbf16> to vector<256x512xf32>
    %cst_25 = arith.constant dense<0.000000e+00> : vector<16x512xf32>
    %27 = tpu.matmul %24, %26, %cst_25 {dimension_numbers = #tpu.dot_dimension_numbers<[1], [0], [0], [1], [0, 0, 1, 1], [], []>} : vector<16x256xf32>, vector<256x512xf32>, vector<16x512xf32> -> vector<16x512xf32>
    %c0_26 = arith.constant 0 : index
    %c0_27 = arith.constant 0 : index
    %28 = vector.load %arg9[%c0_26, %c0_27] : memref<512x128xbf16, #tpu.memory_space<vmem>>, vector<512x128xbf16>
    %29 = arith.extf %28 : vector<512x128xbf16> to vector<512x128xf32>
    %cst_28 = arith.constant dense<0.000000e+00> : vector<16x128xf32>
    %30 = tpu.matmul %27, %29, %cst_28 {dimension_numbers = #tpu.dot_dimension_numbers<[1], [0], [0], [1], [0, 0, 1, 1], [], []>} : vector<16x512xf32>, vector<512x128xf32>, vector<16x128xf32> -> vector<16x128xf32>
    %cst_29 = arith.constant 0.000000e+00 : f32
    %31 = vector.broadcast %cst_29 : f32 to vector<16x128xf32>
    %32 = arith.maximumf %30, %31 : vector<16x128xf32>
    %c0_30 = arith.constant 0 : index
    %c0_31 = arith.constant 0 : index
    %33 = vector.load %arg11[%c0_30, %c0_31] : memref<16x128xf32, #tpu.memory_space<vmem>>, vector<16x128xf32>
    tpu.vector_store %arg11[%c0_30, %c0_31], %32 {strides = array<i32>} : memref<16x128xf32, #tpu.memory_space<vmem>>, vector<16x128xf32>,
    return
  }
}

</mosaic_0001>

<bundles_post_ra>
// kernel: tpu_custom_call.1
= control target key start
LH: loop header
LB: loop body
LE: loop exit
PB: predicated region body
PF: predicated region fallthrough
CT: control target
= control target key end

     0   :  { %17 = vsyncpa [#allocation3], 0  ;;  %s3995_s0 = inlined_call_operand.hbm [shape: bf16[16,64], index: 0, kind: input, shape index: {}]   ;;  %s3996_s1 = inlined_call_operand.hbm [shape: bf16[64,128], index: 1, kind: input, shape index: {}]   ;;  %s3997_s2 = inlined_call_operand.hbm [shape: bf16[128,256], index: 2, kind: input, shape index: {}]   ;;  %s3998_s3 = inlined_call_operand.hbm [shape: bf16[256,512], index: 3, kind: input, shape index: {}]   ;;  %s3999_s4 = inlined_call_operand.hbm [shape: bf16[512,256], index: 4, kind: input, shape index: {}]   ;;  %s4000_s5 = inlined_call_operand.vmem [shape: bf16[16,64], index: 5, kind: input, shape index: {}]   ;;  %s4001_s6 = inlined_call_operand.hbm [shape: bf16[64,128], index: 6, kind: input, shape index: {}]   ;;  %s4002_s7 = inlined_call_operand.hbm [shape: bf16[128,256], index: 7, kind: input, shape index: {}]   ;;  %s4003_s8 = inlined_call_operand.hbm [shape: bf16[256,512], index: 8, kind: input, shape index: {}]   ;;  %s4004_s9 = inlined_call_operand.hbm [shape: bf16[512,128], index: 9, kind: input, shape index: {}]   ;;  %s4005_s10 = inlined_call_operand.hbm [shape: f32[16,256], index: 10, kind: output, shape index: {0}]   ;;  %s4006_s11 = inlined_call_operand.hbm [shape: f32[16,128], index: 11, kind: output, shape index: {1}]  }
   0x1   :  { %18 = vsyncpa [#allocation6], 0 }
   0x2   :  { %19 = vsyncpa [#allocation9], 0 }
   0x3   :  { %20 = vsyncpa [#allocation12], 0 }
   0x4   :  { %21 = vsyncpa [#allocation15], 0 }
   0x5   :  { %22 = vsyncpa [#allocation4], 0 }
   0x6   :  { %23 = vsyncpa [#allocation19], 0  ;;  %s3704_s17 = smov [#allocation5]   ;;  %s3705_s19 = smov [#allocation8]  }
   0x7   :  { %s41_s18 = sshll.u32 %s3704_s17, 4  ;;  %s65_s20 = sshll.u32 %s3705_s19, 4  ;;  %s42_s18 = int_to_ptr.vmem [resolvable:$true] %s41_s18  ;;  %s3782_s20 = int_to_ptr.vmem [resolvable:$true] %s65_s20 }
   0x8   :  { %s3448_s23 = scalar_lea.hbm %s3996_s1, 512 }
   0x9   :  { %p3449_p0 = scmp.ne.s32.totalorder %s3996_s1, %s3448_s23  ;;  %p3452_p1 = scmp.lt.u32.totalorder %s3448_s23, %s3996_s1 }
   0xb   :  { %p3454_p2 = pnand %p3452_p1, %p3449_p0 }
   0xd   :  { %3457 = shalt.err (!%p3454_p2)
}
   0xe   :  { %s3458_s28 = scalar_lea.vmem %s42_s18, 512  ;;  %p3463_p4 = scmp.lt.s32.totalorder %s42_s18, %s42_s18 }
   0xf   :  { %p3459_p3 = scmp.ne.s32.totalorder %s42_s18, %s3458_s28  ;;  %p3464_p5 = scmp.lt.s32.totalorder %s3458_s28, %s3458_s28 }
  0x11   :  { %p3465_p6 = por %p3464_p5, %p3463_p4 }
  0x13   :  { %p3466_p7 = pnand %p3465_p6, %p3459_p3 }
  0x15   :  { %3469 = shalt.err (!%p3466_p7)
}
  0x16   :  { %s3706_s29 = smov 64   ;;  %s3707_s30 = smov 4  }
  0x17   :  { %47 = dma.hbm_to_vmem [thread:$0]  %s3996_s1, 512, %s42_s18, [#allocation6], %s3706_s29, %s3706_s29, %s3707_s30  }
  0x18   :  { %s3470_s16 = scalar_lea.hbm %s3998_s3, 8192 }
  0x19   :  { %p3471_p8 = scmp.ne.s32.totalorder %s3998_s3, %s3470_s16  ;;  %p3474_p9 = scmp.lt.u32.totalorder %s3470_s16, %s3998_s3 }
  0x1b   :  { %p3476_p10 = pnand %p3474_p9, %p3471_p8 }
  0x1d   :  { %3479 = shalt.err (!%p3476_p10)
}
  0x1e   :  { %s3480_s23 = scalar_lea.vmem %s3782_s20, 8192  ;;  %p3485_p12 = scmp.lt.s32.totalorder %s3782_s20, %s3782_s20 }
  0x1f   :  { %p3481_p11 = scmp.ne.s32.totalorder %s3782_s20, %s3480_s23  ;;  %p3486_p13 = scmp.lt.s32.totalorder %s3480_s23, %s3480_s23 }
  0x21   :  { %p3487_p0 = por %p3486_p13, %p3485_p12 }
  0x23   :  { %p3488_p1 = pnand %p3487_p0, %p3481_p11 }
  0x25   :  { %3491 = shalt.err (!%p3488_p1)
}
  0x26   :  { %s3708_s1 = smov 256   ;;  %s3709_s18 = smov 16  }
  0x27   :  { %71 = dma.hbm_to_vmem [thread:$0]  %s3998_s3, 8192, %s3782_s20, [#allocation9], %s3708_s1, %s3708_s1, %s3709_s18  }
  0x28   :  { %s3710_s26 = smov [#allocation11]   ;;  %s3711_s28 = smov [#allocation14]  }
  0x29   :  { %s91_s27 = sshll.u32 %s3710_s26, 4  ;;  %s115_s12 = sshll.u32 %s3711_s28, 4  ;;  %s92_s27 = int_to_ptr.vmem [resolvable:$true] %s91_s27  ;;  %s3819_s12 = int_to_ptr.vmem [resolvable:$true] %s115_s12 }
  0x2a   :  { %s3492_s15 = scalar_lea.hbm %s4001_s6, 512 }
  0x2b   :  { %p3493_p2 = scmp.ne.s32.totalorder %s4001_s6, %s3492_s15  ;;  %p3496_p3 = scmp.lt.u32.totalorder %s3492_s15, %s4001_s6 }
  0x2d   :  { %p3498_p4 = pnand %p3496_p3, %p3493_p2 }
  0x2f   :  { %3501 = shalt.err (!%p3498_p4)
}
  0x30   :  { %s3502_s3 = scalar_lea.vmem %s92_s27, 512  ;;  %p3507_p6 = scmp.lt.s32.totalorder %s92_s27, %s92_s27 }
  0x31   :  { %p3503_p5 = scmp.ne.s32.totalorder %s92_s27, %s3502_s3  ;;  %p3508_p7 = scmp.lt.s32.totalorder %s3502_s3, %s3502_s3 }
  0x33   :  { %p3509_p8 = por %p3508_p7, %p3507_p6 }
  0x35   :  { %p3510_p9 = pnand %p3509_p8, %p3503_p5 }
  0x37   :  { %3513 = shalt.err (!%p3510_p9)
}
  0x38   :  { %97 = dma.hbm_to_vmem [thread:$0]  %s4001_s6, 512, %s92_s27, [#allocation12], %s3706_s29, %s3706_s29, %s3707_s30  }
  0x39   :  { %s3514_s25 = scalar_lea.hbm %s4003_s8, 8192 }
  0x3a   :  { %p3515_p10 = scmp.ne.s32.totalorder %s4003_s8, %s3514_s25  ;;  %p3518_p11 = scmp.lt.u32.totalorder %s3514_s25, %s4003_s8 }
  0x3c   :  { %p3520_p12 = pnand %p3518_p11, %p3515_p10 }
  0x3e   :  { %3523 = shalt.err (!%p3520_p12)
}
  0x3f   :  { %s3524_s15 = scalar_lea.vmem %s3819_s12, 8192  ;;  %p3529_p0 = scmp.lt.s32.totalorder %s3819_s12, %s3819_s12 }
  0x40   :  { %p3525_p13 = scmp.ne.s32.totalorder %s3819_s12, %s3524_s15  ;;  %p3530_p1 = scmp.lt.s32.totalorder %s3524_s15, %s3524_s15 }
  0x42   :  { %p3531_p2 = por %p3530_p1, %p3529_p0 }
  0x44   :  { %p3532_p3 = pnand %p3531_p2, %p3525_p13 }
  0x46   :  { %3535 = shalt.err (!%p3532_p3)
}
  0x47   :  { %121 = dma.hbm_to_vmem [thread:$0]  %s4003_s8, 8192, %s3819_s12, [#allocation15], %s3708_s1, %s3708_s1, %s3709_s18  }
  0x48   :  { %s3712_s16 = smov [#allocation2]   ;;  %s3713_s19 = smov [#allocation7]  }
  0x49   :  { %s29_s17 = sshll.u32 %s3712_s16, 4  ;;  %s53_s21 = sshll.u32 %s3713_s19, 4  ;;  %s30_s17 = int_to_ptr.vmem [resolvable:$true] %s29_s17  ;;  %s3856_s21 = int_to_ptr.vmem [resolvable:$true] %s53_s21 }
  0x4a   :  { %s3536_s22 = scalar_lea.hbm %s3995_s0, 128 }
  0x4b   :  { %p3537_p4 = scmp.ne.s32.totalorder %s3995_s0, %s3536_s22  ;;  %p3540_p5 = scmp.lt.u32.totalorder %s3536_s22, %s3995_s0 }
  0x4d   :  { %p3542_p6 = pnand %p3540_p5, %p3537_p4 }
  0x4f   :  { %3545 = shalt.err (!%p3542_p6)
}
  0x50   :  { %s3546_s8 = scalar_lea.vmem %s30_s17, 128  ;;  %p3551_p8 = scmp.lt.s32.totalorder %s30_s17, %s30_s17 }
  0x51   :  { %p3547_p7 = scmp.ne.s32.totalorder %s30_s17, %s3546_s8  ;;  %p3552_p9 = scmp.lt.s32.totalorder %s3546_s8, %s3546_s8 }
  0x53   :  { %p3553_p10 = por %p3552_p9, %p3551_p8 }
  0x55   :  { %p3554_p11 = pnand %p3553_p10, %p3547_p7 }
  0x57   :  { %3557 = shalt.err (!%p3554_p11)
}
  0x58   :  { %35 = dma.hbm_to_vmem [thread:$0]  %s3995_s0, 128, %s30_s17, [#allocation3], %s3706_s29, %s3706_s29, %s3707_s30  }
  0x59   :  { %s3558_s15 = scalar_lea.hbm %s3997_s2, 2048 }
  0x5a   :  { %p3559_p12 = scmp.ne.s32.totalorder %s3997_s2, %s3558_s15  ;;  %p3562_p13 = scmp.lt.u32.totalorder %s3558_s15, %s3997_s2 }
  0x5c   :  { %p3564_p0 = pnand %p3562_p13, %p3559_p12 }
  0x5e   :  { %3567 = shalt.err (!%p3564_p0)
}
  0x5f   :  { %s3568_s3 = scalar_lea.vmem %s3856_s21, 2048  ;;  %p3573_p2 = scmp.lt.s32.totalorder %s3856_s21, %s3856_s21 }
  0x60   :  { %p3569_p1 = scmp.ne.s32.totalorder %s3856_s21, %s3568_s3  ;;  %p3574_p3 = scmp.lt.s32.totalorder %s3568_s3, %s3568_s3 }
  0x62   :  { %p3575_p4 = por %p3574_p3, %p3573_p2 }
  0x64   :  { %p3576_p5 = pnand %p3575_p4, %p3569_p1 }
  0x66   :  { %3579 = shalt.err (!%p3576_p5)
}
  0x67   :  { %s3714_s0 = smov 128   ;;  %s3715_s17 = smov 8  }
  0x68   :  { %59 = dma.hbm_to_vmem [thread:$0]  %s3997_s2, 2048, %s3856_s21, [#allocation6], %s3714_s0, %s3714_s0, %s3715_s17  }
  0x69   :  { %s3716_s23 = smov [#allocation10]   ;;  %s3717_s25 = smov [#allocation13]  }
  0x6a   :  { %s77_s24 = sshll.u32 %s3716_s23, 4  ;;  %s103_s26 = sshll.u32 %s3717_s25, 4  ;;  %s78_s24 = int_to_ptr.vmem [resolvable:$true] %s77_s24  ;;  %s3893_s26 = int_to_ptr.vmem [resolvable:$true] %s103_s26 }
  0x6b   :  { %s3580_s28 = scalar_lea.hbm %s3999_s4, 8192 }
  0x6c   :  { %p3581_p6 = scmp.ne.s32.totalorder %s3999_s4, %s3580_s28  ;;  %p3584_p7 = scmp.lt.u32.totalorder %s3580_s28, %s3999_s4 }
  0x6e   :  { %p3586_p8 = pnand %p3584_p7, %p3581_p6 }
  0x70   :  { %3589 = shalt.err (!%p3586_p8)
}
  0x71   :  { %s3590_s2 = scalar_lea.vmem %s78_s24, 8192  ;;  %p3595_p10 = scmp.lt.s32.totalorder %s78_s24, %s78_s24 }
  0x72   :  { %p3591_p9 = scmp.ne.s32.totalorder %s78_s24, %s3590_s2  ;;  %p3596_p11 = scmp.lt.s32.totalorder %s3590_s2, %s3590_s2 }
  0x74   :  { %p3597_p12 = por %p3596_p11, %p3595_p10 }
  0x76   :  { %p3598_p13 = pnand %p3597_p12, %p3591_p9 }
  0x78   :  { %3601 = shalt.err (!%p3598_p13)
}
  0x79   :  { %83 = dma.hbm_to_vmem [thread:$0]  %s3999_s4, 8192, %s78_s24, [#allocation9], %s3714_s0, %s3714_s0, %s3715_s17  }
  0x7a   :  { %s3602_s3 = scalar_lea.hbm %s4002_s7, 2048 }
  0x7b   :  { %p3603_p0 = scmp.ne.s32.totalorder %s4002_s7, %s3602_s3  ;;  %p3606_p1 = scmp.lt.u32.totalorder %s3602_s3, %s4002_s7 }
  0x7d   :  { %p3608_p2 = pnand %p3606_p1, %p3603_p0 }
  0x7f   :  { %3611 = shalt.err (!%p3608_p2)
}
  0x80   :  { %s3612_s8 = scalar_lea.vmem %s3893_s26, 2048  ;;  %p3617_p4 = scmp.lt.s32.totalorder %s3893_s26, %s3893_s26 }
  0x81   :  { %p3613_p3 = scmp.ne.s32.totalorder %s3893_s26, %s3612_s8  ;;  %p3618_p5 = scmp.lt.s32.totalorder %s3612_s8, %s3612_s8 }
  0x83   :  { %p3619_p6 = por %p3618_p5, %p3617_p4 }
  0x85   :  { %p3620_p7 = pnand %p3619_p6, %p3613_p3 }
  0x87   :  { %3623 = shalt.err (!%p3620_p7)
}
  0x88   :  { %109 = dma.hbm_to_vmem [thread:$0]  %s4002_s7, 2048, %s3893_s26, [#allocation12], %s3714_s0, %s3714_s0, %s3715_s17  }
  0x89   :  { %s3718_s12 = smov [#allocation16]   ;;  %s3624_s15 = scalar_lea.hbm %s4004_s9, 4096 }
  0x8a   :  { %s127_s28 = sshll.u32 %s3718_s12, 4  ;;  %p3625_p8 = scmp.ne.s32.totalorder %s4004_s9, %s3624_s15  ;;  %s128_s28 = int_to_ptr.vmem [resolvable:$true] %s127_s28 }
  0x8b   :  { %p3628_p9 = scmp.lt.u32.totalorder %s3624_s15, %s4004_s9 }
  0x8d   :  { %p3630_p10 = pnand %p3628_p9, %p3625_p8 }
  0x8f   :  { %3633 = shalt.err (!%p3630_p10)
}
  0x90   :  { %s3634_s16 = scalar_lea.vmem %s128_s28, 4096  ;;  %p3639_p12 = scmp.lt.s32.totalorder %s128_s28, %s128_s28 }
  0x91   :  { %p3635_p11 = scmp.ne.s32.totalorder %s128_s28, %s3634_s16  ;;  %p3640_p13 = scmp.lt.s32.totalorder %s3634_s16, %s3634_s16 }
  0x93   :  { %p3641_p0 = por %p3640_p13, %p3639_p12 }
  0x95   :  { %p3642_p1 = pnand %p3641_p0, %p3635_p11 }
  0x97   :  { %3645 = shalt.err (!%p3642_p1)
}
  0x98   :  { %133 = dma.hbm_to_vmem [thread:$0]  %s4004_s9, 4096, %s128_s28, [#allocation15], %s3706_s29, %s3706_s29, %s3707_s30  }
  0x99   :  { %3690 = dma.done.wait [#allocation3], 128  }
  0x9a   :  { %3691 = vsyncadd [#allocation3], 4294967168 }
  0x9b   :  { %3692 = dma.done.wait [#allocation6], 2560  }
  0x9c   :  { %3693 = vsyncadd [#allocation6], 4294964736 }
  0x9d   :  { %3694 = dma.done.wait [#allocation9], 16384  }
  0x9e   :  { %3695 = vsyncadd [#allocation9], 4294950912 }
  0x9f   :  { %3696 = dma.done.wait [#allocation12], 2560  }
  0xa0   :  { %3697 = vsyncadd [#allocation12], 4294964736 }
  0xa1   :  { %3698 = dma.done.wait [#allocation15], 12288  }
  0xa2   :  { %3699 = vsyncadd [#allocation15], 4294955008  ;;  %v1988_v0 = vld [vmem:[#allocation5] sm:$0xff]   ;;  %v2151_v1 = vld [vmem:[#allocation5 + $0x8] sm:$0xff]   ;;  %vm181_vm0 = vcmask 523264   ;;  %v3719_v23 = vmov 0.0  }
  0xa3   :  { %2323 = vmatprep.subr.bf16.mxu0 %v1988_v0  ;;  %v1984_v2 = vld [vmem:[#allocation2] sm:$0xff]   ;;  %v3112_v4 = vld [vmem:[#allocation7 + $0x4] ss:$8 sps:$4 sm:$0xff]   ;;  %v3114_v5 = vld [vmem:[#allocation7] ss:$8 sps:$4 sm:$0xff]   ;;  %375 = vmatprep.mubr.f32.mxu1 %v3719_v23 }
  0xa4   :  { %2325 = vmatpush3.bf16.msra.mxu0 %v1988_v0  ;;  %v1985_v3 = vunpack.c.l.bf16 %v1984_v2  ;;  %v3115_v6 = vld [vmem:[#allocation7 + $0x14] ss:$8 sps:$4 sm:$0xff]   ;;  %2339 = vmatprep.subr.bf16.mxu1 %v3112_v4  ;;  %v3117_v8 = vld [vmem:[#allocation7 + $0x10] ss:$8 sps:$4 sm:$0xff]   ;;  %v3118_v9 = vld [vmem:[#allocation7 + $0x24] ss:$8 sps:$4 sm:$0xff]   ;;  %v1986_v15 = vunpack.c.h.bf16 %v1984_v2 }
  0xa5   :  { %2327 = vmatprep.subr.bf16.mxu0 %v2151_v1  ;;  %v2152_v7 = vld [vmem:[#allocation5 + $0x10] sm:$0xff]   ;;  %2341 = vmatpush1.bf16.msra.mxu1 %v3114_v5  ;;  %v2153_v10 = vld [vmem:[#allocation5 + $0x18] sm:$0xff]   ;;  %v3120_v11 = vld [vmem:[#allocation7 + $0x20] ss:$8 sps:$4 sm:$0xff]  }
  0xa6   :  { %2300 = vmatprep.mubr.msk.f32.mxu0 %vm181_vm0, %v1985_v3  ;;  %2343 = vmatprep.subr.bf16.mxu1 %v3115_v6  ;;  %v3121_v12 = vld [vmem:[#allocation7 + $0x34] ss:$8 sps:$4 sm:$0xff]   ;;  %v3123_v13 = vld [vmem:[#allocation7 + $0x30] ss:$8 sps:$4 sm:$0xff]   ;;  %v3124_v14 = vld [vmem:[#allocation7 + $0x44] ss:$8 sps:$4 sm:$0xff]  }
  0xa7   :  { %v3126_v16 = vld [vmem:[#allocation7 + $0x40] ss:$8 sps:$4 sm:$0xff]   ;;  %v3127_v17 = vld [vmem:[#allocation7 + $0x54] ss:$8 sps:$4 sm:$0xff]   ;;  %v3129_v18 = vld [vmem:[#allocation7 + $0x50] ss:$8 sps:$4 sm:$0xff]  }
  0xa8   :  { %2329 = vmatpush3.bf16.msra.mxu0 %v2151_v1  ;;  %v3130_v19 = vld [vmem:[#allocation7 + $0x64] ss:$8 sps:$4 sm:$0xff]   ;;  %v3132_v20 = vld [vmem:[#allocation7 + $0x60] ss:$8 sps:$4 sm:$0xff]   ;;  %v3133_v21 = vld [vmem:[#allocation7 + $0x74] ss:$8 sps:$4 sm:$0xff]  }
  0xa9   :  { %2331 = vmatprep.subr.bf16.mxu0 %v2152_v7  ;;  %2345 = vmatpush1.bf16.msra.mxu1 %v3117_v8  ;;  %v3135_v22 = vld [vmem:[#allocation7 + $0x70] ss:$8 sps:$4 sm:$0xff]   ;;  %v3136_v24 = vld [vmem:[#allocation8 + $0xc] ss:$16 sps:$4 sm:$0xff]   ;;  %v3139_v25 = vld [vmem:[#allocation8 + $0x4] ss:$16 sps:$4 sm:$0xff]  }
  0xaa   :  { %2347 = vmatprep.subr.bf16.mxu1 %v3118_v9  ;;  %v3141_v26 = vld [vmem:[#allocation8] ss:$16 sps:$4 sm:$0xff]   ;;  %v3145_v27 = vld [vmem:[#allocation8 + $0x24] ss:$16 sps:$4 sm:$0xff]   ;;  %v3138_v57 = vld [vmem:[#allocation8 + $0x8] ss:$16 sps:$4 sm:$0xff]  }
  0xab   :  { %v3147_v28 = vld [vmem:[#allocation8 + $0x20] ss:$16 sps:$4 sm:$0xff]   ;;  %v3151_v29 = vld [vmem:[#allocation8 + $0x44] ss:$16 sps:$4 sm:$0xff]   ;;  %v3142_v59 = vld [vmem:[#allocation8 + $0x2c] ss:$16 sps:$4 sm:$0xff]  }
  0xac   :  { %2333 = vmatpush3.bf16.msra.mxu0 %v2152_v7  ;;  %v3153_v30 = vld [vmem:[#allocation8 + $0x40] ss:$16 sps:$4 sm:$0xff]   ;;  %v3157_v31 = vld [vmem:[#allocation8 + $0x64] ss:$16 sps:$4 sm:$0xff]   ;;  %v3144_v61 = vld [vmem:[#allocation8 + $0x28] ss:$16 sps:$4 sm:$0xff]  }
  0xad   :  { %2335 = vmatprep.subr.bf16.mxu0 %v2153_v10  ;;  %2349 = vmatpush1.bf16.msra.mxu1 %v3120_v11  ;;  %v3159_v32 = vld [vmem:[#allocation8 + $0x60] ss:$16 sps:$4 sm:$0xff]   ;;  %v3163_v33 = vld [vmem:[#allocation8 + $0x84] ss:$16 sps:$4 sm:$0xff]   ;;  %v3148_v62 = vld [vmem:[#allocation8 + $0x4c] ss:$16 sps:$4 sm:$0xff]  }
  0xae   :  { %2351 = vmatprep.subr.bf16.mxu1 %v3121_v12  ;;  %v3165_v34 = vld [vmem:[#allocation8 + $0x80] ss:$16 sps:$4 sm:$0xff]   ;;  %v3169_v35 = vld [vmem:[#allocation8 + $0xa4] ss:$16 sps:$4 sm:$0xff]   ;;  %v3150_v63 = vld [vmem:[#allocation8 + $0x48] ss:$16 sps:$4 sm:$0xff]  }
  0xaf   :  { %v3171_v36 = vld [vmem:[#allocation8 + $0xa0] ss:$16 sps:$4 sm:$0xff]   ;;  %v3175_v37 = vld [vmem:[#allocation8 + $0xc4] ss:$16 sps:$4 sm:$0xff]   ;;  %v3154_v0 = vld [vmem:[#allocation8 + $0x6c] ss:$16 sps:$4 sm:$0xff]  }
  0xb0   :  { %2337 = vmatpush3.bf16.msra.mxu0 %v2153_v10  ;;  %v3177_v38 = vld [vmem:[#allocation8 + $0xc0] ss:$16 sps:$4 sm:$0xff]   ;;  %v3181_v39 = vld [vmem:[#allocation8 + $0xe4] ss:$16 sps:$4 sm:$0xff]   ;;  %v3156_v1 = vld [vmem:[#allocation8 + $0x68] ss:$16 sps:$4 sm:$0xff]  }
  0xb1   :  { %2353 = vmatpush1.bf16.msra.mxu1 %v3123_v13  ;;  %2371 = vmatprep.subr.bf16.mxu0 %v3139_v25  ;;  %v3183_v40 = vld [vmem:[#allocation8 + $0xe0] ss:$16 sps:$4 sm:$0xff]   ;;  %v3187_v41 = vld [vmem:[#allocation8 + $0x104] ss:$16 sps:$4 sm:$0xff]   ;;  %v3160_v2 = vld [vmem:[#allocation8 + $0x8c] ss:$16 sps:$4 sm:$0xff]  }
  0xb2   :  { %2355 = vmatprep.subr.bf16.mxu1 %v3124_v14  ;;  %v3189_v42 = vld [vmem:[#allocation8 + $0x100] ss:$16 sps:$4 sm:$0xff]   ;;  %v3193_v43 = vld [vmem:[#allocation8 + $0x124] ss:$16 sps:$4 sm:$0xff]   ;;  %v3162_v3 = vld [vmem:[#allocation8 + $0x88] ss:$16 sps:$4 sm:$0xff]  }
  0xb3   :  { %2301 = vmatmul.mubr.msk.f32.vlgmr.msra.gmra.mrb[0].mxu0 %vm181_vm0, %v1986_v15  ;;  %v3195_v44 = vld [vmem:[#allocation8 + $0x120] ss:$16 sps:$4 sm:$0xff]   ;;  %v3199_v45 = vld [vmem:[#allocation8 + $0x144] ss:$16 sps:$4 sm:$0xff]   ;;  %v3166_v4 = vld [vmem:[#allocation8 + $0xac] ss:$16 sps:$4 sm:$0xff]  }
  0xb4   :  { %2373 = vmatpush1.bf16.msra.mxu0 %v3141_v26  ;;  %v3201_v46 = vld [vmem:[#allocation8 + $0x140] ss:$16 sps:$4 sm:$0xff]   ;;  %v3205_v47 = vld [vmem:[#allocation8 + $0x164] ss:$16 sps:$4 sm:$0xff]   ;;  %v3168_v5 = vld [vmem:[#allocation8 + $0xa8] ss:$16 sps:$4 sm:$0xff]  }
  0xb5   :  { %2357 = vmatpush1.bf16.msra.mxu1 %v3126_v16  ;;  %2375 = vmatprep.subr.bf16.mxu0 %v3145_v27  ;;  %v3207_v48 = vld [vmem:[#allocation8 + $0x160] ss:$16 sps:$4 sm:$0xff]   ;;  %v3211_v49 = vld [vmem:[#allocation8 + $0x184] ss:$16 sps:$4 sm:$0xff]   ;;  %v3172_v6 = vld [vmem:[#allocation8 + $0xcc] ss:$16 sps:$4 sm:$0xff]  }
  0xb6   :  { %2359 = vmatprep.subr.bf16.mxu1 %v3127_v17  ;;  %v3213_v50 = vld [vmem:[#allocation8 + $0x180] ss:$16 sps:$4 sm:$0xff]   ;;  %v3217_v51 = vld [vmem:[#allocation8 + $0x1a4] ss:$16 sps:$4 sm:$0xff]   ;;  %v3174_v7 = vld [vmem:[#allocation8 + $0xc8] ss:$16 sps:$4 sm:$0xff]  }
  0xb7   :  { %v3219_v52 = vld [vmem:[#allocation8 + $0x1a0] ss:$16 sps:$4 sm:$0xff]   ;;  %v3223_v53 = vld [vmem:[#allocation8 + $0x1c4] ss:$16 sps:$4 sm:$0xff]   ;;  %v3178_v8 = vld [vmem:[#allocation8 + $0xec] ss:$16 sps:$4 sm:$0xff]  }
  0xb8   :  { %2377 = vmatpush1.bf16.msra.mxu0 %v3147_v28  ;;  %v3225_v54 = vld [vmem:[#allocation8 + $0x1c0] ss:$16 sps:$4 sm:$0xff]   ;;  %v3229_v55 = vld [vmem:[#allocation8 + $0x1e4] ss:$16 sps:$4 sm:$0xff]   ;;  %v3180_v9 = vld [vmem:[#allocation8 + $0xe8] ss:$16 sps:$4 sm:$0xff]  }
  0xb9   :  { %2361 = vmatpush1.bf16.msra.mxu1 %v3129_v18  ;;  %2379 = vmatprep.subr.bf16.mxu0 %v3151_v29  ;;  %v3231_v56 = vld [vmem:[#allocation8 + $0x1e0] ss:$16 sps:$4 sm:$0xff]   ;;  %v3184_v10 = vld [vmem:[#allocation8 + $0x10c] ss:$16 sps:$4 sm:$0xff]   ;;  %v3186_v11 = vld [vmem:[#allocation8 + $0x108] ss:$16 sps:$4 sm:$0xff]  }
  0xba   :  { %2363 = vmatprep.subr.bf16.mxu1 %v3130_v19  ;;  %v3190_v12 = vld [vmem:[#allocation8 + $0x12c] ss:$16 sps:$4 sm:$0xff]   ;;  %v3192_v13 = vld [vmem:[#allocation8 + $0x128] ss:$16 sps:$4 sm:$0xff]   ;;  %v2008_v27 = vld [vmem:[#allocation11] sm:$0xff]  }
  0xbb   :  { %v3196_v14 = vld [vmem:[#allocation8 + $0x14c] ss:$16 sps:$4 sm:$0xff]   ;;  %v3198_v15 = vld [vmem:[#allocation8 + $0x148] ss:$16 sps:$4 sm:$0xff]  }
  0xbc   :  { %2381 = vmatpush1.bf16.msra.mxu0 %v3153_v30  ;;  %v3202_v16 = vld [vmem:[#allocation8 + $0x16c] ss:$16 sps:$4 sm:$0xff]   ;;  %v3204_v17 = vld [vmem:[#allocation8 + $0x168] ss:$16 sps:$4 sm:$0xff]  }
  0xbd   :  { %2365 = vmatpush1.bf16.msra.mxu1 %v3132_v20  ;;  %2383 = vmatprep.subr.bf16.mxu0 %v3157_v31  ;;  %v3208_v18 = vld [vmem:[#allocation8 + $0x18c] ss:$16 sps:$4 sm:$0xff]   ;;  %v3210_v19 = vld [vmem:[#allocation8 + $0x188] ss:$16 sps:$4 sm:$0xff]  }
  0xbe   :  { %2367 = vmatprep.subr.bf16.mxu1 %v3133_v21  ;;  %v3214_v20 = vld [vmem:[#allocation8 + $0x1ac] ss:$16 sps:$4 sm:$0xff]   ;;  %v3216_v21 = vld [vmem:[#allocation8 + $0x1a8] ss:$16 sps:$4 sm:$0xff]  }
  0xbf   :  { %v3226_v25 = vld [vmem:[#allocation8 + $0x1ec] ss:$16 sps:$4 sm:$0xff]   ;;  %v3228_v26 = vld [vmem:[#allocation8 + $0x1e8] ss:$16 sps:$4 sm:$0xff]  }
  0xc0   :  { %2385 = vmatpush1.bf16.msra.mxu0 %v3159_v32  ;;  %v3232_v28 = vld [vmem:[#allocation10 + $0x4] ss:$8 sps:$4 sm:$0xff]   ;;  %v3234_v30 = vld [vmem:[#allocation10] ss:$8 sps:$4 sm:$0xff]   ;;  %v2004_v32 = vld [vmem:[%s4000_s5] sm:$0xff]   ;;  %s3720_s5 = smov [#allocation17]  }
  0xc1   :  { %2369 = vmatpush1.bf16.msra.mxu1 %v3135_v22  ;;  %2387 = vmatprep.subr.bf16.mxu0 %v3163_v33  ;;  %v3220_v22 = vld [vmem:[#allocation8 + $0x1cc] ss:$16 sps:$4 sm:$0xff]   ;;  %s1947_s30 = sshll.u32 %s3720_s5, 4  ;;  %s1948_s30 = int_to_ptr.vmem [resolvable:$true] %s1947_s30 }
  0xc2   :  { %2435 = vmatprep.subr.bf16.mxu1 %v3136_v24  ;;  %v3222_v24 = vld [vmem:[#allocation8 + $0x1c8] ss:$16 sps:$4 sm:$0xff]   ;;  %v3235_v33 = vld [vmem:[#allocation10 + $0x14] ss:$8 sps:$4 sm:$0xff]   ;;  %s3646_s19 = scalar_lea.vmem %s1948_s30, 512  ;;  %p3651_p3 = scmp.lt.s32.totalorder %s1948_s30, %s1948_s30 }
  0xc3   :  { %p3647_p2 = scmp.ne.s32.totalorder %s1948_s30, %s3646_s19  ;;  %p3652_p4 = scmp.lt.s32.totalorder %s3646_s19, %s3646_s19 }
  0xc4   :  { %2389 = vmatpush1.bf16.msra.mxu0 %v3165_v34  ;;  %v2154_v34 = vld [vmem:[#allocation11 + $0x8] sm:$0xff]  }
  0xc5   :  { %2391 = vmatprep.subr.bf16.mxu0 %v3169_v35  ;;  %p3653_p5 = por %p3652_p4, %p3651_p3 }
  0xc7   :  { %p3654_p6 = pnand %p3653_p5, %p3647_p2 }
  0xc8   :  { %2393 = vmatpush1.bf16.msra.mxu0 %v3171_v36  ;;  %v2005_v36 = vunpack.c.l.bf16 %v2004_v32 }
  0xc9   :  { %2395 = vmatprep.subr.bf16.mxu0 %v3175_v37 }
  0xcc   :  { %2397 = vmatpush1.bf16.msra.mxu0 %v3177_v38  ;;  %v3237_v38 = vld [vmem:[#allocation10 + $0x10] ss:$8 sps:$4 sm:$0xff]  }
  0xcd   :  { %2399 = vmatprep.subr.bf16.mxu0 %v3181_v39  ;;  %v2155_v39 = vld [vmem:[#allocation11 + $0x10] sm:$0xff]  }
  0xd0   :  { %2401 = vmatpush1.bf16.msra.mxu0 %v3183_v40  ;;  %v3238_v40 = vld [vmem:[#allocation10 + $0x24] ss:$8 sps:$4 sm:$0xff]  }
  0xd1   :  { %2403 = vmatprep.subr.bf16.mxu0 %v3187_v41  ;;  %v3240_v41 = vld [vmem:[#allocation10 + $0x20] ss:$8 sps:$4 sm:$0xff]  }
  0xd4   :  { %2405 = vmatpush1.bf16.msra.mxu0 %v3189_v42  ;;  %v2156_v42 = vld [vmem:[#allocation11 + $0x18] sm:$0xff]  }
  0xd5   :  { %2407 = vmatprep.subr.bf16.mxu0 %v3193_v43  ;;  %v3241_v43 = vld [vmem:[#allocation10 + $0x34] ss:$8 sps:$4 sm:$0xff]  }
  0xd8   :  { %2409 = vmatpush1.bf16.msra.mxu0 %v3195_v44  ;;  %v3243_v44 = vld [vmem:[#allocation10 + $0x30] ss:$8 sps:$4 sm:$0xff]  }
  0xd9   :  { %2411 = vmatprep.subr.bf16.mxu0 %v3199_v45  ;;  %v3268_v45 = vld [vmem:[#allocation13 + $0x4] ss:$8 sps:$4 sm:$0xff]  }
  0xdc   :  { %2413 = vmatpush1.bf16.msra.mxu0 %v3201_v46  ;;  %v3244_v46 = vld [vmem:[#allocation10 + $0x44] ss:$8 sps:$4 sm:$0xff]  }
  0xdd   :  { %2415 = vmatprep.subr.bf16.mxu0 %v3205_v47  ;;  %v2006_v47 = vunpack.c.h.bf16 %v2004_v32 }
  0xe0   :  { %2417 = vmatpush1.bf16.msra.mxu0 %v3207_v48  ;;  %v3270_v48 = vld [vmem:[#allocation13] ss:$8 sps:$4 sm:$0xff]  }
  0xe1   :  { %2419 = vmatprep.subr.bf16.mxu0 %v3211_v49  ;;  %v3246_v49 = vld [vmem:[#allocation10 + $0x40] ss:$8 sps:$4 sm:$0xff]  }
  0xe4   :  { %2421 = vmatpush1.bf16.msra.mxu0 %v3213_v50  ;;  %v3274_v50 = vld [vmem:[#allocation13 + $0x14] ss:$8 sps:$4 sm:$0xff]  }
  0xe5   :  { %2423 = vmatprep.subr.bf16.mxu0 %v3217_v51  ;;  %v3247_v51 = vld [vmem:[#allocation10 + $0x54] ss:$8 sps:$4 sm:$0xff]  }
  0xe8   :  { %2425 = vmatpush1.bf16.msra.mxu0 %v3219_v52  ;;  %v3276_v52 = vld [vmem:[#allocation13 + $0x10] ss:$8 sps:$4 sm:$0xff]  }
  0xe9   :  { %2427 = vmatprep.subr.bf16.mxu0 %v3223_v53  ;;  %v3249_v53 = vld [vmem:[#allocation10 + $0x50] ss:$8 sps:$4 sm:$0xff]  }
  0xec   :  { %2429 = vmatpush1.bf16.msra.mxu0 %v3225_v54  ;;  %v3280_v54 = vld [vmem:[#allocation13 + $0x24] ss:$8 sps:$4 sm:$0xff]  }
  0xed   :  { %2431 = vmatprep.subr.bf16.mxu0 %v3229_v55  ;;  %v3250_v55 = vld [vmem:[#allocation10 + $0x64] ss:$8 sps:$4 sm:$0xff]  }
  0xf0   :  { %2433 = vmatpush1.bf16.msra.mxu0 %v3231_v56  ;;  %v3282_v56 = vld [vmem:[#allocation13 + $0x20] ss:$8 sps:$4 sm:$0xff]  }
  0xf1   :  { %2499 = vmatprep.subr.bf16.mxu0 %v3232_v28 }
 0x186   :  { %v2302_v58 = vpop.f32.mrb[0].mxu0 }
 0x187   :  { %v254_v60 = vpop.f32.mrb[1].mxu0 }
 0x188   :  { %376 = vmatmul.mubr.f32.vlgmr.msra.gmra.mrb[0].mxu1 %v254_v60  ;;  %v3288_v60 = vld [vmem:[#allocation13 + $0x30] ss:$8 sps:$4 sm:$0xff]  }
 0x189   :  { %381 = vmatprep.mubr.f32.mxu1 %v3719_v23  ;;  %2437 = vmatpush1.bf16.msra.mxu1 %v3138_v57  ;;  %v3252_v57 = vld [vmem:[#allocation10 + $0x60] ss:$8 sps:$4 sm:$0xff]  }
 0x18a   :  { %2439 = vmatprep.subr.bf16.mxu1 %v3142_v59  ;;  %v3253_v59 = vld [vmem:[#allocation10 + $0x74] ss:$8 sps:$4 sm:$0xff]  }
 0x18c   :  { %382 = vmatmul.mubr.f32.gmra.mrb[2].mxu1 %v2302_v58  ;;  %v3286_v58 = vld [vmem:[#allocation13 + $0x34] ss:$8 sps:$4 sm:$0xff]  }
 0x18d   :  { %2441 = vmatpush1.bf16.msra.mxu1 %v3144_v61  ;;  %v3255_v61 = vld [vmem:[#allocation10 + $0x70] ss:$8 sps:$4 sm:$0xff]  }
 0x18e   :  { %2443 = vmatprep.subr.bf16.mxu1 %v3148_v62  ;;  %v3256_v62 = vld [vmem:[#allocation10 + $0x84] ss:$8 sps:$4 sm:$0xff]  }
 0x191   :  { %2445 = vmatpush1.bf16.msra.mxu1 %v3150_v63  ;;  %v3258_v63 = vld [vmem:[#allocation10 + $0x80] ss:$8 sps:$4 sm:$0xff]  }
 0x192   :  { %2447 = vmatprep.subr.bf16.mxu1 %v3154_v0  ;;  %v3259_v0 = vld [vmem:[#allocation10 + $0x94] ss:$8 sps:$4 sm:$0xff]  }
 0x195   :  { %2449 = vmatpush1.bf16.msra.mxu1 %v3156_v1  ;;  %v3261_v1 = vld [vmem:[#allocation10 + $0x90] ss:$8 sps:$4 sm:$0xff]  }
 0x196   :  { %2451 = vmatprep.subr.bf16.mxu1 %v3160_v2  ;;  %v3262_v2 = vld [vmem:[#allocation10 + $0xa4] ss:$8 sps:$4 sm:$0xff]  }
 0x199   :  { %2453 = vmatpush1.bf16.msra.mxu1 %v3162_v3  ;;  %v3264_v3 = vld [vmem:[#allocation10 + $0xa0] ss:$8 sps:$4 sm:$0xff]  }
 0x19a   :  { %2455 = vmatprep.subr.bf16.mxu1 %v3166_v4  ;;  %v3265_v4 = vld [vmem:[#allocation10 + $0xb4] ss:$8 sps:$4 sm:$0xff]  }
 0x19d   :  { %2457 = vmatpush1.bf16.msra.mxu1 %v3168_v5  ;;  %v3267_v5 = vld [vmem:[#allocation10 + $0xb0] ss:$8 sps:$4 sm:$0xff]  }
 0x19e   :  { %2459 = vmatprep.subr.bf16.mxu1 %v3172_v6  ;;  %v3271_v6 = vld [vmem:[#allocation10 + $0xc4] ss:$8 sps:$4 sm:$0xff]  }
 0x1a1   :  { %2461 = vmatpush1.bf16.msra.mxu1 %v3174_v7  ;;  %v3273_v7 = vld [vmem:[#allocation10 + $0xc0] ss:$8 sps:$4 sm:$0xff]  }
 0x1a2   :  { %2463 = vmatprep.subr.bf16.mxu1 %v3178_v8  ;;  %v3277_v8 = vld [vmem:[#allocation10 + $0xd4] ss:$8 sps:$4 sm:$0xff]  }
 0x1a5   :  { %2465 = vmatpush1.bf16.msra.mxu1 %v3180_v9  ;;  %v3279_v9 = vld [vmem:[#allocation10 + $0xd0] ss:$8 sps:$4 sm:$0xff]  }
 0x1a6   :  { %2467 = vmatprep.subr.bf16.mxu1 %v3184_v10  ;;  %v3283_v10 = vld [vmem:[#allocation10 + $0xe4] ss:$8 sps:$4 sm:$0xff]  }
 0x1a9   :  { %2469 = vmatpush1.bf16.msra.mxu1 %v3186_v11  ;;  %v3285_v11 = vld [vmem:[#allocation10 + $0xe0] ss:$8 sps:$4 sm:$0xff]  }
 0x1aa   :  { %2471 = vmatprep.subr.bf16.mxu1 %v3190_v12  ;;  %v3289_v12 = vld [vmem:[#allocation10 + $0xf4] ss:$8 sps:$4 sm:$0xff]  }
 0x1ad   :  { %2473 = vmatpush1.bf16.msra.mxu1 %v3192_v13  ;;  %v3291_v13 = vld [vmem:[#allocation10 + $0xf0] ss:$8 sps:$4 sm:$0xff]  }
 0x1ae   :  { %2475 = vmatprep.subr.bf16.mxu1 %v3196_v14  ;;  %v3292_v14 = vld [vmem:[#allocation13 + $0x44] ss:$8 sps:$4 sm:$0xff]  }
 0x1b1   :  { %2477 = vmatpush1.bf16.msra.mxu1 %v3198_v15  ;;  %v3294_v15 = vld [vmem:[#allocation13 + $0x40] ss:$8 sps:$4 sm:$0xff]  }
 0x1b2   :  { %2479 = vmatprep.subr.bf16.mxu1 %v3202_v16  ;;  %v3295_v16 = vld [vmem:[#allocation10 + $0x104] ss:$8 sps:$4 sm:$0xff]  }
 0x1b5   :  { %2481 = vmatpush1.bf16.msra.mxu1 %v3204_v17  ;;  %v3298_v17 = vld [vmem:[#allocation13 + $0x54] ss:$8 sps:$4 sm:$0xff]  }
 0x1b6   :  { %2483 = vmatprep.subr.bf16.mxu1 %v3208_v18  ;;  %v3300_v18 = vld [vmem:[#allocation13 + $0x50] ss:$8 sps:$4 sm:$0xff]  }
 0x1b9   :  { %2485 = vmatpush1.bf16.msra.mxu1 %v3210_v19  ;;  %v3304_v19 = vld [vmem:[#allocation13 + $0x64] ss:$8 sps:$4 sm:$0xff]  }
 0x1ba   :  { %2487 = vmatprep.subr.bf16.mxu1 %v3214_v20  ;;  %v3306_v20 = vld [vmem:[#allocation13 + $0x60] ss:$8 sps:$4 sm:$0xff]  }
 0x1bd   :  { %2489 = vmatpush1.bf16.msra.mxu1 %v3216_v21  ;;  %v3310_v21 = vld [vmem:[#allocation13 + $0x74] ss:$8 sps:$4 sm:$0xff]  }
 0x1be   :  { %2491 = vmatprep.subr.bf16.mxu1 %v3220_v22  ;;  %v3312_v22 = vld [vmem:[#allocation13 + $0x70] ss:$8 sps:$4 sm:$0xff]  }
 0x1c1   :  { %2493 = vmatpush1.bf16.msra.mxu1 %v3222_v24  ;;  %v3352_v24 = vld [vmem:[#allocation14 + $0x4] ss:$16 sps:$4 sm:$0xff]  }
 0x1c2   :  { %2495 = vmatprep.subr.bf16.mxu1 %v3226_v25 }
 0x1c5   :  { %2497 = vmatpush1.bf16.msra.mxu1 %v3228_v26 }
 0x1c6   :  { %2627 = vmatprep.subr.bf16.mxu1 %v2008_v27 }
 0x25b   :  { %v377_v29 = vpop.f32.mrb[0].mxu1 }
 0x25c   :  { %v379_v31 = vpop.f32.mrb[1].mxu1 }
 0x25d   :  { %644 = vmatprep.mubr.f32.mxu0 %v379_v31  ;;  %721 = vmatprep.mubr.f32.mxu1 %v379_v31 }
 0x25e   :  { %645 = vmatmul.mubr.f32.vlgmr.msra.gmra.mrb[2].mxu0 %v377_v29  ;;  %722 = vmatmul.mubr.f32.vlgmr.msra.gmra.mrb[4].mxu1 %v377_v29 }
 0x25f   :  { %2629 = vmatpush3.bf16.msra.mxu1 %v2008_v27  ;;  %v383_v35 = vpop.f32.mrb[2].mxu1  ;;  %2501 = vmatpush1.bf16.msra.mxu0 %v3234_v30  ;;  %v3297_v27 = vld [vmem:[#allocation10 + $0x100] ss:$8 sps:$4 sm:$0xff]   ;;  %v3301_v30 = vld [vmem:[#allocation10 + $0x114] ss:$8 sps:$4 sm:$0xff]  }
 0x260   :  { %v385_v37 = vpop.f32.mrb[3].mxu1  ;;  %2631 = vmatprep.subr.bf16.mxu1 %v2154_v34  ;;  %2503 = vmatprep.subr.bf16.mxu0 %v3235_v33  ;;  %v3303_v33 = vld [vmem:[#allocation10 + $0x110] ss:$8 sps:$4 sm:$0xff]  }
 0x261   :  { %650 = vmatprep.mubr.f32.mxu0 %v385_v37  ;;  %727 = vmatprep.mubr.f32.mxu1 %v385_v37  ;;  %v3309_v37 = vld [vmem:[#allocation10 + $0x120] ss:$8 sps:$4 sm:$0xff]  }
 0x262   :  { %651 = vmatmul.mubr.f32.gmra.mrb[4].mxu0 %v383_v35  ;;  %728 = vmatmul.mubr.f32.gmra.mrb[6].mxu1 %v383_v35 }
 0x263   :  { %2633 = vmatpush3.bf16.msra.mxu1 %v2154_v34  ;;  %2319 = vmatprep.mubr.msk.f32.mxu1 %vm181_vm0, %v2005_v36  ;;  %v3307_v36 = vld [vmem:[#allocation10 + $0x124] ss:$8 sps:$4 sm:$0xff]  }
 0x264   :  { %2635 = vmatprep.subr.bf16.mxu1 %v2155_v39  ;;  %2505 = vmatpush1.bf16.msra.mxu0 %v3237_v38  ;;  %v3313_v38 = vld [vmem:[#allocation10 + $0x134] ss:$8 sps:$4 sm:$0xff]  }
 0x265   :  { %2507 = vmatprep.subr.bf16.mxu0 %v3238_v40  ;;  %v3316_v40 = vld [vmem:[#allocation10 + $0x144] ss:$8 sps:$4 sm:$0xff]  }
 0x267   :  { %2637 = vmatpush3.bf16.msra.mxu1 %v2155_v39  ;;  %v3315_v39 = vld [vmem:[#allocation10 + $0x130] ss:$8 sps:$4 sm:$0xff]  }
 0x268   :  { %2639 = vmatprep.subr.bf16.mxu1 %v2156_v42  ;;  %2509 = vmatpush1.bf16.msra.mxu0 %v3240_v41  ;;  %v3354_v41 = vld [vmem:[#allocation14] ss:$16 sps:$4 sm:$0xff]  }
 0x269   :  { %2511 = vmatprep.subr.bf16.mxu0 %v3241_v43  ;;  %v3318_v43 = vld [vmem:[#allocation10 + $0x140] ss:$8 sps:$4 sm:$0xff]  }
 0x26b   :  { %2641 = vmatpush3.bf16.msra.mxu1 %v2156_v42 }
 0x26c   :  { %2513 = vmatpush1.bf16.msra.mxu0 %v3243_v44  ;;  %2643 = vmatprep.subr.bf16.mxu1 %v3268_v45  ;;  %v3358_v44 = vld [vmem:[#allocation14 + $0x24] ss:$16 sps:$4 sm:$0xff]  }
 0x26d   :  { %2515 = vmatprep.subr.bf16.mxu0 %v3244_v46  ;;  %v3319_v46 = vld [vmem:[#allocation10 + $0x154] ss:$8 sps:$4 sm:$0xff]  }
 0x26e   :  { %2320 = vmatmul.mubr.msk.f32.vlgmr.msra.gmra.mrb[8].mxu1 %vm181_vm0, %v2006_v47  ;;  %v3360_v47 = vld [vmem:[#allocation14 + $0x20] ss:$16 sps:$4 sm:$0xff]  }
 0x26f   :  { %2645 = vmatpush1.bf16.msra.mxu1 %v3270_v48  ;;  %1301 = vmatprep.mubr.f32.mxu1 %v3719_v23  ;;  %v3321_v48 = vld [vmem:[#allocation10 + $0x150] ss:$8 sps:$4 sm:$0xff]  }
 0x270   :  { %2517 = vmatpush1.bf16.msra.mxu0 %v3246_v49  ;;  %2647 = vmatprep.subr.bf16.mxu1 %v3274_v50  ;;  %v3364_v49 = vld [vmem:[#allocation14 + $0x44] ss:$16 sps:$4 sm:$0xff]  }
 0x271   :  { %2519 = vmatprep.subr.bf16.mxu0 %v3247_v51  ;;  %v3322_v50 = vld [vmem:[#allocation10 + $0x164] ss:$8 sps:$4 sm:$0xff]   ;;  %v3366_v51 = vld [vmem:[#allocation14 + $0x40] ss:$16 sps:$4 sm:$0xff]  }
 0x273   :  { %2649 = vmatpush1.bf16.msra.mxu1 %v3276_v52  ;;  %v3324_v52 = vld [vmem:[#allocation10 + $0x160] ss:$8 sps:$4 sm:$0xff]  }
 0x274   :  { %2521 = vmatpush1.bf16.msra.mxu0 %v3249_v53  ;;  %2651 = vmatprep.subr.bf16.mxu1 %v3280_v54  ;;  %v3370_v53 = vld [vmem:[#allocation14 + $0x64] ss:$16 sps:$4 sm:$0xff]  }
 0x275   :  { %2523 = vmatprep.subr.bf16.mxu0 %v3250_v55  ;;  %v3325_v54 = vld [vmem:[#allocation10 + $0x174] ss:$8 sps:$4 sm:$0xff]   ;;  %v3372_v55 = vld [vmem:[#allocation14 + $0x60] ss:$16 sps:$4 sm:$0xff]  }
 0x277   :  { %2653 = vmatpush1.bf16.msra.mxu1 %v3282_v56  ;;  %v3376_v56 = vld [vmem:[#allocation14 + $0x84] ss:$16 sps:$4 sm:$0xff]  }
 0x278   :  { %2525 = vmatpush1.bf16.msra.mxu0 %v3252_v57  ;;  %2655 = vmatprep.subr.bf16.mxu1 %v3286_v58  ;;  %v3328_v57 = vld [vmem:[#allocation10 + $0x184] ss:$8 sps:$4 sm:$0xff]   ;;  %v3378_v58 = vld [vmem:[#allocation14 + $0x80] ss:$16 sps:$4 sm:$0xff]  }
 0x279   :  { %2527 = vmatprep.subr.bf16.mxu0 %v3253_v59  ;;  %v3330_v59 = vld [vmem:[#allocation10 + $0x180] ss:$8 sps:$4 sm:$0xff]  }
 0x27b   :  { %2657 = vmatpush1.bf16.msra.mxu1 %v3288_v60  ;;  %v3382_v60 = vld [vmem:[#allocation14 + $0xa4] ss:$16 sps:$4 sm:$0xff]  }
 0x27c   :  { %2529 = vmatpush1.bf16.msra.mxu0 %v3255_v61  ;;  %2659 = vmatprep.subr.bf16.mxu1 %v3292_v14  ;;  %v3331_v61 = vld [vmem:[#allocation10 + $0x194] ss:$8 sps:$4 sm:$0xff]   ;;  %v3408_v14 = vld [vmem:[#allocation14 + $0x120] ss:$16 sps:$4 sm:$0xff]  }
 0x27d   :  { %2531 = vmatprep.subr.bf16.mxu0 %v3256_v62  ;;  %v3384_v62 = vld [vmem:[#allocation14 + $0xa0] ss:$16 sps:$4 sm:$0xff]  }
 0x27f   :  { %2661 = vmatpush1.bf16.msra.mxu1 %v3294_v15  ;;  %v3345_v15 = vld [vmem:[#allocation10 + $0x1d0] ss:$8 sps:$4 sm:$0xff]  }
 0x280   :  { %2533 = vmatpush1.bf16.msra.mxu0 %v3258_v63  ;;  %2663 = vmatprep.subr.bf16.mxu1 %v3298_v17  ;;  %v3333_v63 = vld [vmem:[#allocation10 + $0x190] ss:$8 sps:$4 sm:$0xff]   ;;  %v3346_v17 = vld [vmem:[#allocation10 + $0x1e4] ss:$8 sps:$4 sm:$0xff]  }
 0x281   :  { %2535 = vmatprep.subr.bf16.mxu0 %v3259_v0  ;;  %v3388_v0 = vld [vmem:[#allocation14 + $0xc4] ss:$16 sps:$4 sm:$0xff]  }
 0x283   :  { %2665 = vmatpush1.bf16.msra.mxu1 %v3300_v18  ;;  %v3414_v18 = vld [vmem:[#allocation14 + $0x140] ss:$16 sps:$4 sm:$0xff]  }
 0x284   :  { %2537 = vmatpush1.bf16.msra.mxu0 %v3261_v1  ;;  %2667 = vmatprep.subr.bf16.mxu1 %v3304_v19  ;;  %v3334_v1 = vld [vmem:[#allocation10 + $0x1a4] ss:$8 sps:$4 sm:$0xff]   ;;  %v3348_v19 = vld [vmem:[#allocation10 + $0x1e0] ss:$8 sps:$4 sm:$0xff]  }
 0x285   :  { %2539 = vmatprep.subr.bf16.mxu0 %v3262_v2  ;;  %v3390_v2 = vld [vmem:[#allocation14 + $0xc0] ss:$16 sps:$4 sm:$0xff]  }
 0x287   :  { %2669 = vmatpush1.bf16.msra.mxu1 %v3306_v20  ;;  %v3418_v20 = vld [vmem:[#allocation14 + $0x164] ss:$16 sps:$4 sm:$0xff]  }
 0x288   :  { %2541 = vmatpush1.bf16.msra.mxu0 %v3264_v3  ;;  %2671 = vmatprep.subr.bf16.mxu1 %v3310_v21  ;;  %v3336_v3 = vld [vmem:[#allocation10 + $0x1a0] ss:$8 sps:$4 sm:$0xff]   ;;  %v3349_v21 = vld [vmem:[#allocation10 + $0x1f4] ss:$8 sps:$4 sm:$0xff]  }
 0x289   :  { %2543 = vmatprep.subr.bf16.mxu0 %v3265_v4  ;;  %v3394_v4 = vld [vmem:[#allocation14 + $0xe4] ss:$16 sps:$4 sm:$0xff]  }
 0x28b   :  { %2673 = vmatpush1.bf16.msra.mxu1 %v3312_v22  ;;  %v3420_v22 = vld [vmem:[#allocation14 + $0x160] ss:$16 sps:$4 sm:$0xff]  }
 0x28c   :  { %2545 = vmatpush1.bf16.msra.mxu0 %v3267_v5  ;;  %2675 = vmatprep.subr.bf16.mxu1 %v3352_v24  ;;  %v3337_v5 = vld [vmem:[#allocation10 + $0x1b4] ss:$8 sps:$4 sm:$0xff]   ;;  %v3351_v24 = vld [vmem:[#allocation10 + $0x1f0] ss:$8 sps:$4 sm:$0xff]  }
 0x28d   :  { %2547 = vmatprep.subr.bf16.mxu0 %v3271_v6  ;;  %v3396_v6 = vld [vmem:[#allocation14 + $0xe0] ss:$16 sps:$4 sm:$0xff]  }
 0x290   :  { %2549 = vmatpush1.bf16.msra.mxu0 %v3273_v7  ;;  %v3339_v7 = vld [vmem:[#allocation10 + $0x1b0] ss:$8 sps:$4 sm:$0xff]  }
 0x291   :  { %2551 = vmatprep.subr.bf16.mxu0 %v3277_v8  ;;  %v3400_v8 = vld [vmem:[#allocation14 + $0x104] ss:$16 sps:$4 sm:$0xff]  }
 0x294   :  { %2553 = vmatpush1.bf16.msra.mxu0 %v3279_v9  ;;  %v3340_v9 = vld [vmem:[#allocation10 + $0x1c4] ss:$8 sps:$4 sm:$0xff]  }
 0x295   :  { %2555 = vmatprep.subr.bf16.mxu0 %v3283_v10  ;;  %v3402_v10 = vld [vmem:[#allocation14 + $0x100] ss:$16 sps:$4 sm:$0xff]  }
 0x298   :  { %2557 = vmatpush1.bf16.msra.mxu0 %v3285_v11  ;;  %v3342_v11 = vld [vmem:[#allocation10 + $0x1c0] ss:$8 sps:$4 sm:$0xff]  }
 0x299   :  { %2559 = vmatprep.subr.bf16.mxu0 %v3289_v12  ;;  %v3406_v12 = vld [vmem:[#allocation14 + $0x124] ss:$16 sps:$4 sm:$0xff]  }
 0x29c   :  { %2561 = vmatpush1.bf16.msra.mxu0 %v3291_v13  ;;  %v3343_v13 = vld [vmem:[#allocation10 + $0x1d4] ss:$8 sps:$4 sm:$0xff]  }
 0x29d   :  { %2563 = vmatprep.subr.bf16.mxu0 %v3295_v16  ;;  %v3412_v16 = vld [vmem:[#allocation14 + $0x144] ss:$16 sps:$4 sm:$0xff]  }
 0x331   :  { %v646_v25 = vpop.f32.mrb[2].mxu0  ;;  %v3955_v26 = vpop.f32.mrb[4].mxu1 }
 0x332   :  { %v648_v28 = vpop.f32.mrb[3].mxu0  ;;  %v725_v29 = vpop.f32.mrb[5].mxu1 }
 0x333   :  { %990 = vmatprep.mubr.f32.mxu0 %v648_v28  ;;  %v3426_v28 = vld [vmem:[#allocation14 + $0x180] ss:$16 sps:$4 sm:$0xff]  }
 0x334   :  { %991 = vmatmul.mubr.f32.vlgmr.msra.gmra.mrb[6].mxu0 %v646_v25  ;;  %v3424_v25 = vld [vmem:[#allocation14 + $0x184] ss:$16 sps:$4 sm:$0xff]  }
 0x335   :  { %2565 = vmatpush1.bf16.msra.mxu0 %v3297_v27  ;;  %v652_v31 = vpop.f32.mrb[4].mxu0  ;;  %v3957_v32 = vpop.f32.mrb[6].mxu1  ;;  %v3355_v27 = vld [vmem:[#allocation14 + $0xc] ss:$16 sps:$4 sm:$0xff]  }
 0x336   :  { %v654_v34 = vpop.f32.mrb[5].mxu0  ;;  %v3959_v35 = vpop.f32.mrb[7].mxu1  ;;  %2567 = vmatprep.subr.bf16.mxu0 %v3301_v30  ;;  %v3361_v30 = vld [vmem:[#allocation14 + $0x2c] ss:$16 sps:$4 sm:$0xff]  }
 0x337   :  { %996 = vmatprep.mubr.f32.mxu0 %v654_v34  ;;  %v3363_v34 = vld [vmem:[#allocation14 + $0x28] ss:$16 sps:$4 sm:$0xff]  }
 0x338   :  { %997 = vmatmul.mubr.f32.gmra.mrb[8].mxu0 %v652_v31  ;;  %v3430_v31 = vld [vmem:[#allocation14 + $0x1a4] ss:$16 sps:$4 sm:$0xff]  }
 0x339   :  { %2569 = vmatpush1.bf16.msra.mxu0 %v3303_v33  ;;  %1067 = vmatprep.mubr.f32.mxu0 %v725_v29  ;;  %v3357_v29 = vld [vmem:[#allocation14 + $0x8] ss:$16 sps:$4 sm:$0xff]   ;;  %v3432_v33 = vld [vmem:[#allocation14 + $0x1a0] ss:$16 sps:$4 sm:$0xff]  }
 0x33a   :  { %2571 = vmatprep.subr.bf16.mxu0 %v3307_v36  ;;  %v3436_v36 = vld [vmem:[#allocation14 + $0x1c4] ss:$16 sps:$4 sm:$0xff]  }
 0x33d   :  { %2573 = vmatpush1.bf16.msra.mxu0 %v3309_v37  ;;  %v3367_v37 = vld [vmem:[#allocation14 + $0x4c] ss:$16 sps:$4 sm:$0xff]  }
 0x33e   :  { %2575 = vmatprep.subr.bf16.mxu0 %v3313_v38  ;;  %v3438_v38 = vld [vmem:[#allocation14 + $0x1c0] ss:$16 sps:$4 sm:$0xff]  }
 0x341   :  { %2577 = vmatpush1.bf16.msra.mxu0 %v3315_v39  ;;  %v2321_v42 = vpop.f32.mrb[8].mxu1  ;;  %v3369_v39 = vld [vmem:[#allocation14 + $0x48] ss:$16 sps:$4 sm:$0xff]  }
 0x342   :  { %v1180_v45 = vpop.f32.mrb[9].mxu1  ;;  %2579 = vmatprep.subr.bf16.mxu0 %v3316_v40  ;;  %v3442_v40 = vld [vmem:[#allocation14 + $0x1e4] ss:$16 sps:$4 sm:$0xff]  }
 0x343   :  { %1302 = vmatmul.mubr.f32.vlgmr.msra.gmra.mrb[10].mxu1 %v1180_v45  ;;  %v3391_v45 = vld [vmem:[#allocation14 + $0xcc] ss:$16 sps:$4 sm:$0xff]  }
 0x344   :  { %1307 = vmatprep.mubr.f32.mxu1 %v3719_v23  ;;  %2677 = vmatpush1.bf16.msra.mxu1 %v3354_v41  ;;  %v3327_v23 = vld [vmem:[#allocation10 + $0x170] ss:$8 sps:$4 sm:$0xff]  }
 0x345   :  { %2581 = vmatpush1.bf16.msra.mxu0 %v3318_v43  ;;  %2679 = vmatprep.subr.bf16.mxu1 %v3358_v44  ;;  %v3444_v41 = vld [vmem:[#allocation14 + $0x1e0] ss:$16 sps:$4 sm:$0xff]   ;;  %v3381_v43 = vld [vmem:[#allocation14 + $0x88] ss:$16 sps:$4 sm:$0xff]  }
 0x346   :  { %2583 = vmatprep.subr.bf16.mxu0 %v3319_v46  ;;  %v3387_v44 = vld [vmem:[#allocation14 + $0xa8] ss:$16 sps:$4 sm:$0xff]  }
 0x347   :  { %1308 = vmatmul.mubr.f32.gmra.mrb[12].mxu1 %v2321_v42  ;;  %v3379_v42 = vld [vmem:[#allocation14 + $0x8c] ss:$16 sps:$4 sm:$0xff]   ;;  %v3393_v46 = vld [vmem:[#allocation14 + $0xc8] ss:$16 sps:$4 sm:$0xff]  }
 0x348   :  { %2681 = vmatpush1.bf16.msra.mxu1 %v3360_v47  ;;  %v3397_v47 = vld [vmem:[#allocation14 + $0xec] ss:$16 sps:$4 sm:$0xff]  }
 0x349   :  { %2585 = vmatpush1.bf16.msra.mxu0 %v3321_v48  ;;  %2683 = vmatprep.subr.bf16.mxu1 %v3364_v49  ;;  %v3399_v48 = vld [vmem:[#allocation14 + $0xe8] ss:$16 sps:$4 sm:$0xff]   ;;  %v3403_v49 = vld [vmem:[#allocation14 + $0x10c] ss:$16 sps:$4 sm:$0xff]  }
 0x34a   :  { %2587 = vmatprep.subr.bf16.mxu0 %v3322_v50  ;;  %v3405_v50 = vld [vmem:[#allocation14 + $0x108] ss:$16 sps:$4 sm:$0xff]  }
 0x34c   :  { %2685 = vmatpush1.bf16.msra.mxu1 %v3366_v51  ;;  %v3409_v51 = vld [vmem:[#allocation14 + $0x12c] ss:$16 sps:$4 sm:$0xff]  }
 0x34d   :  { %2589 = vmatpush1.bf16.msra.mxu0 %v3324_v52  ;;  %2687 = vmatprep.subr.bf16.mxu1 %v3370_v53  ;;  %v3411_v52 = vld [vmem:[#allocation14 + $0x128] ss:$16 sps:$4 sm:$0xff]   ;;  %v3415_v53 = vld [vmem:[#allocation14 + $0x14c] ss:$16 sps:$4 sm:$0xff]  }
 0x34e   :  { %2591 = vmatprep.subr.bf16.mxu0 %v3325_v54  ;;  %v3417_v54 = vld [vmem:[#allocation14 + $0x148] ss:$16 sps:$4 sm:$0xff]  }
 0x350   :  { %2689 = vmatpush1.bf16.msra.mxu1 %v3372_v55  ;;  %v3421_v55 = vld [vmem:[#allocation14 + $0x16c] ss:$16 sps:$4 sm:$0xff]  }
 0x351   :  { %2593 = vmatpush1.bf16.msra.mxu0 %v3327_v23  ;;  %2691 = vmatprep.subr.bf16.mxu1 %v3376_v56  ;;  %v3423_v23 = vld [vmem:[#allocation14 + $0x168] ss:$16 sps:$4 sm:$0xff]   ;;  %v3427_v56 = vld [vmem:[#allocation14 + $0x18c] ss:$16 sps:$4 sm:$0xff]  }
 0x352   :  { %2595 = vmatprep.subr.bf16.mxu0 %v3328_v57  ;;  %v3429_v57 = vld [vmem:[#allocation14 + $0x188] ss:$16 sps:$4 sm:$0xff]  }
 0x354   :  { %2693 = vmatpush1.bf16.msra.mxu1 %v3378_v58  ;;  %v3433_v58 = vld [vmem:[#allocation14 + $0x1ac] ss:$16 sps:$4 sm:$0xff]  }
 0x355   :  { %2597 = vmatpush1.bf16.msra.mxu0 %v3330_v59  ;;  %2695 = vmatprep.subr.bf16.mxu1 %v3382_v60  ;;  %v3435_v59 = vld [vmem:[#allocation14 + $0x1a8] ss:$16 sps:$4 sm:$0xff]   ;;  %v3439_v60 = vld [vmem:[#allocation14 + $0x1cc] ss:$16 sps:$4 sm:$0xff]  }
 0x356   :  { %2599 = vmatprep.subr.bf16.mxu0 %v3331_v61  ;;  %v3441_v61 = vld [vmem:[#allocation14 + $0x1c8] ss:$16 sps:$4 sm:$0xff]  }
 0x358   :  { %2697 = vmatpush1.bf16.msra.mxu1 %v3384_v62  ;;  %v3445_v62 = vld [vmem:[#allocation14 + $0x1ec] ss:$16 sps:$4 sm:$0xff]  }
 0x359   :  { %2601 = vmatpush1.bf16.msra.mxu0 %v3333_v63  ;;  %2699 = vmatprep.subr.bf16.mxu1 %v3388_v0  ;;  %v3447_v63 = vld [vmem:[#allocation14 + $0x1e8] ss:$16 sps:$4 sm:$0xff]   ;;  %v2164_v0 = vld [vmem:[#allocation16 + $0x40] sm:$0xff]  }
 0x35a   :  { %2603 = vmatprep.subr.bf16.mxu0 %v3334_v1 }
 0x35c   :  { %2701 = vmatpush1.bf16.msra.mxu1 %v3390_v2 }
 0x35d   :  { %2605 = vmatpush1.bf16.msra.mxu0 %v3336_v3  ;;  %2703 = vmatprep.subr.bf16.mxu1 %v3394_v4  ;;  %v2024_v3 = vld [vmem:[#allocation16] sm:$0xff]   ;;  %v2165_v4 = vld [vmem:[#allocation16 + $0x48] sm:$0xff]  }
 0x35e   :  { %2607 = vmatprep.subr.bf16.mxu0 %v3337_v5 }
 0x360   :  { %2705 = vmatpush1.bf16.msra.mxu1 %v3396_v6 }
 0x361   :  { %2609 = vmatpush1.bf16.msra.mxu0 %v3339_v7  ;;  %2707 = vmatprep.subr.bf16.mxu1 %v3400_v8  ;;  %v2157_v7 = vld [vmem:[#allocation16 + $0x8] sm:$0xff]   ;;  %v2166_v8 = vld [vmem:[#allocation16 + $0x50] sm:$0xff]  }
 0x362   :  { %2611 = vmatprep.subr.bf16.mxu0 %v3340_v9  ;;  %v2158_v9 = vld [vmem:[#allocation16 + $0x10] sm:$0xff]  }
 0x364   :  { %2709 = vmatpush1.bf16.msra.mxu1 %v3402_v10  ;;  %v2167_v10 = vld [vmem:[#allocation16 + $0x58] sm:$0xff]  }
 0x365   :  { %2613 = vmatpush1.bf16.msra.mxu0 %v3342_v11  ;;  %2711 = vmatprep.subr.bf16.mxu1 %v3406_v12  ;;  %v2159_v11 = vld [vmem:[#allocation16 + $0x18] sm:$0xff]   ;;  %v2168_v12 = vld [vmem:[#allocation16 + $0x60] sm:$0xff]  }
 0x366   :  { %2615 = vmatprep.subr.bf16.mxu0 %v3343_v13  ;;  %v2160_v13 = vld [vmem:[#allocation16 + $0x20] sm:$0xff]  }
 0x368   :  { %2713 = vmatpush1.bf16.msra.mxu1 %v3408_v14  ;;  %v2169_v14 = vld [vmem:[#allocation16 + $0x68] sm:$0xff]  }
 0x369   :  { %2617 = vmatpush1.bf16.msra.mxu0 %v3345_v15  ;;  %2715 = vmatprep.subr.bf16.mxu1 %v3412_v16  ;;  %v2161_v15 = vld [vmem:[#allocation16 + $0x28] sm:$0xff]   ;;  %v2170_v16 = vld [vmem:[#allocation16 + $0x70] sm:$0xff]  }
 0x36a   :  { %2619 = vmatprep.subr.bf16.mxu0 %v3346_v17  ;;  %v2162_v17 = vld [vmem:[#allocation16 + $0x30] sm:$0xff]  }
 0x36c   :  { %2717 = vmatpush1.bf16.msra.mxu1 %v3414_v18  ;;  %v2171_v18 = vld [vmem:[#allocation16 + $0x78] sm:$0xff]  }
 0x36d   :  { %2621 = vmatpush1.bf16.msra.mxu0 %v3348_v19  ;;  %2719 = vmatprep.subr.bf16.mxu1 %v3418_v20  ;;  %v2163_v19 = vld [vmem:[#allocation16 + $0x38] sm:$0xff]  }
 0x36e   :  { %2623 = vmatprep.subr.bf16.mxu0 %v3349_v21 }
 0x370   :  { %2721 = vmatpush1.bf16.msra.mxu1 %v3420_v22 }
 0x371   :  { %2625 = vmatpush1.bf16.msra.mxu0 %v3351_v24  ;;  %2723 = vmatprep.subr.bf16.mxu1 %v3424_v25 }
 0x372   :  { %2739 = vmatprep.subr.bf16.mxu0 %v3355_v27 }
 0x374   :  { %1068 = vmatmul.mubr.f32.vlgmr.msra.gmra.mrb[6].mxu0 %v3955_v26  ;;  %2725 = vmatpush1.bf16.msra.mxu1 %v3426_v28  ;;  %v3373_v26 = vld [vmem:[#allocation14 + $0x6c] ss:$16 sps:$4 sm:$0xff]  }
 0x375   :  { %1073 = vmatprep.mubr.f32.mxu0 %v3959_v35  ;;  %2741 = vmatpush1.bf16.msra.mxu0 %v3357_v29  ;;  %v3375_v35 = vld [vmem:[#allocation14 + $0x68] ss:$16 sps:$4 sm:$0xff]  }
 0x376   :  { %2743 = vmatprep.subr.bf16.mxu0 %v3361_v30  ;;  %2727 = vmatprep.subr.bf16.mxu1 %v3430_v31  ;;  %v2180_v30 = vld [vmem:[#allocation16 + $0xc0] sm:$0xff]  }
 0x378   :  { %1074 = vmatmul.mubr.f32.gmra.mrb[8].mxu0 %v3957_v32  ;;  %2729 = vmatpush1.bf16.msra.mxu1 %v3432_v33  ;;  %v3385_v32 = vld [vmem:[#allocation14 + $0xac] ss:$16 sps:$4 sm:$0xff]  }
 0x379   :  { %2745 = vmatpush1.bf16.msra.mxu0 %v3363_v34  ;;  %2731 = vmatprep.subr.bf16.mxu1 %v3436_v36 }
 0x37a   :  { %2747 = vmatprep.subr.bf16.mxu0 %v3367_v37  ;;  %v2172_v37 = vld [vmem:[#allocation16 + $0x80] sm:$0xff]  }
 0x37c   :  { %2733 = vmatpush1.bf16.msra.mxu1 %v3438_v38  ;;  %v2181_v38 = vld [vmem:[#allocation16 + $0xc8] sm:$0xff]  }
 0x37d   :  { %2749 = vmatpush1.bf16.msra.mxu0 %v3369_v39  ;;  %2735 = vmatprep.subr.bf16.mxu1 %v3442_v40 }
 0x37e   :  { %2751 = vmatprep.subr.bf16.mxu0 %v3373_v26 }
 0x380   :  { %2737 = vmatpush1.bf16.msra.mxu1 %v3444_v41 }
 0x381   :  { %2753 = vmatpush1.bf16.msra.mxu0 %v3375_v35  ;;  %2803 = vmatprep.subr.bf16.mxu1 %v2164_v0  ;;  %v2173_v35 = vld [vmem:[#allocation16 + $0x88] sm:$0xff]  }
 0x382   :  { %2755 = vmatprep.subr.bf16.mxu0 %v3379_v42  ;;  %v2182_v42 = vld [vmem:[#allocation16 + $0xd0] sm:$0xff]  }
 0x385   :  { %2757 = vmatpush1.bf16.msra.mxu0 %v3381_v43  ;;  %v2174_v43 = vld [vmem:[#allocation16 + $0x90] sm:$0xff]  }
 0x386   :  { %2759 = vmatprep.subr.bf16.mxu0 %v3385_v32  ;;  %v2183_v32 = vld [vmem:[#allocation16 + $0xd8] sm:$0xff]  }
 0x389   :  { %2761 = vmatpush1.bf16.msra.mxu0 %v3387_v44  ;;  %v2175_v44 = vld [vmem:[#allocation16 + $0x98] sm:$0xff]  }
 0x38a   :  { %2763 = vmatprep.subr.bf16.mxu0 %v3391_v45  ;;  %v2184_v45 = vld [vmem:[#allocation16 + $0xe0] sm:$0xff]  }
 0x38d   :  { %2765 = vmatpush1.bf16.msra.mxu0 %v3393_v46  ;;  %v2176_v46 = vld [vmem:[#allocation16 + $0xa0] sm:$0xff]  }
 0x38e   :  { %2767 = vmatprep.subr.bf16.mxu0 %v3397_v47  ;;  %v2185_v47 = vld [vmem:[#allocation16 + $0xe8] sm:$0xff]  }
 0x391   :  { %2769 = vmatpush1.bf16.msra.mxu0 %v3399_v48  ;;  %v2177_v48 = vld [vmem:[#allocation16 + $0xa8] sm:$0xff]  }
 0x392   :  { %2771 = vmatprep.subr.bf16.mxu0 %v3403_v49  ;;  %v2186_v49 = vld [vmem:[#allocation16 + $0xf0] sm:$0xff]  }
 0x395   :  { %2773 = vmatpush1.bf16.msra.mxu0 %v3405_v50  ;;  %v2178_v50 = vld [vmem:[#allocation16 + $0xb0] sm:$0xff]  }
 0x396   :  { %2775 = vmatprep.subr.bf16.mxu0 %v3409_v51  ;;  %v2187_v51 = vld [vmem:[#allocation16 + $0xf8] sm:$0xff]  }
 0x399   :  { %2777 = vmatpush1.bf16.msra.mxu0 %v3411_v52  ;;  %v2179_v52 = vld [vmem:[#allocation16 + $0xb8] sm:$0xff]  }
 0x39a   :  { %2779 = vmatprep.subr.bf16.mxu0 %v3415_v53 }
 0x39d   :  { %2781 = vmatpush1.bf16.msra.mxu0 %v3417_v54 }
 0x39e   :  { %2783 = vmatprep.subr.bf16.mxu0 %v3421_v55 }
 0x3a1   :  { %2785 = vmatpush1.bf16.msra.mxu0 %v3423_v23 }
 0x3a2   :  { %2787 = vmatprep.subr.bf16.mxu0 %v3427_v56 }
 0x3a5   :  { %2789 = vmatpush1.bf16.msra.mxu0 %v3429_v57 }
 0x3a6   :  { %2791 = vmatprep.subr.bf16.mxu0 %v3433_v58 }
 0x3a9   :  { %2793 = vmatpush1.bf16.msra.mxu0 %v3435_v59 }
 0x3aa   :  { %2795 = vmatprep.subr.bf16.mxu0 %v3439_v60 }
 0x3ad   :  { %2797 = vmatpush1.bf16.msra.mxu0 %v3441_v61 }
 0x3ae   :  { %2799 = vmatprep.subr.bf16.mxu0 %v3445_v62 }
 0x3b1   :  { %2801 = vmatpush1.bf16.msra.mxu0 %v3447_v63 }
 0x416   :  { %v1303_v1 = vpop.f32.mrb[10].mxu1 }
 0x417   :  { %v1305_v2 = vpop.f32.mrb[11].mxu1 }
 0x418   :  { %1570 = vmatprep.mubr.f32.mxu1 %v1305_v2  ;;  %1647 = vmatprep.mubr.f32.mxu0 %v1305_v2 }
 0x419   :  { %1571 = vmatmul.mubr.f32.vlgmr.msra.gmra.mrb[14].mxu1 %v1303_v1  ;;  %1648 = vmatmul.mubr.f32.vlgmr.msra.gmra.mrb[10].mxu0 %v1303_v1 }
 0x41a   :  { %v1309_v5 = vpop.f32.mrb[12].mxu1  ;;  %2805 = vmatpush3.bf16.msra.mxu1 %v2024_v3 }
 0x41b   :  { %v1311_v6 = vpop.f32.mrb[13].mxu1  ;;  %2807 = vmatprep.subr.bf16.mxu1 %v2165_v4 }
 0x41c   :  { %1576 = vmatprep.mubr.f32.mxu1 %v1311_v6  ;;  %1653 = vmatprep.mubr.f32.mxu0 %v1311_v6 }
 0x41d   :  { %1577 = vmatmul.mubr.f32.gmra.mrb[16].mxu1 %v1309_v5  ;;  %1654 = vmatmul.mubr.f32.gmra.mrb[12].mxu0 %v1309_v5 }
 0x41e   :  { %2809 = vmatpush3.bf16.msra.mxu1 %v2157_v7 }
 0x41f   :  { %2811 = vmatprep.subr.bf16.mxu1 %v2166_v8 }
 0x422   :  { %2813 = vmatpush3.bf16.msra.mxu1 %v2158_v9 }
 0x423   :  { %2815 = vmatprep.subr.bf16.mxu1 %v2167_v10 }
 0x426   :  { %2817 = vmatpush3.bf16.msra.mxu1 %v2159_v11 }
 0x427   :  { %2819 = vmatprep.subr.bf16.mxu1 %v2168_v12 }
 0x42a   :  { %2821 = vmatpush3.bf16.msra.mxu1 %v2160_v13 }
 0x42b   :  { %2823 = vmatprep.subr.bf16.mxu1 %v2169_v14 }
 0x42e   :  { %2825 = vmatpush3.bf16.msra.mxu1 %v2161_v15 }
 0x42f   :  { %2827 = vmatprep.subr.bf16.mxu1 %v2170_v16 }
 0x432   :  { %2829 = vmatpush3.bf16.msra.mxu1 %v2162_v17 }
 0x433   :  { %2831 = vmatprep.subr.bf16.mxu1 %v2171_v18 }
 0x436   :  { %2833 = vmatpush3.bf16.msra.mxu1 %v2163_v19 }
 0x437   :  { %2835 = vmatprep.subr.bf16.mxu1 %v2180_v30 }
 0x447   :  { %v1069_v20 = vpop.f32.mrb[6].mxu0 }
 0x448   :  { %v1080_v21 = vmax.f32 %v1069_v20, 0.0  ;;  %v1071_v22 = vpop.f32.mrb[7].mxu0 }
 0x449   :  { %v1081_v24 = vmax.f32 %v1071_v22, 0.0 }
 0x44a   :  { %1084 = vst [vmem:[#allocation17] sm:$0xff] %v1080_v21 }
 0x44b   :  { %1085 = vst [vmem:[#allocation17 + $0x8] sm:$0xff] %v1081_v24  ;;  %v1075_v25 = vpop.f32.mrb[8].mxu0 }
 0x44c   :  { %v1082_v27 = vmax.f32 %v1075_v25, 0.0  ;;  %v1077_v28 = vpop.f32.mrb[9].mxu0 }
 0x44d   :  { %v1083_v29 = vmax.f32 %v1077_v28, 0.0 }
 0x44e   :  { %1086 = vst [vmem:[#allocation17 + $0x10] sm:$0xff] %v1082_v27 }
 0x44f   :  { %1087 = vst [vmem:[#allocation17 + $0x18] sm:$0xff] %v1083_v29 }
 0x4ec   :  { %v1572_v31 = vpop.f32.mrb[14].mxu1  ;;  %v1649_v33 = vpop.f32.mrb[10].mxu0 }
 0x4ed   :  { %v1574_v34 = vpop.f32.mrb[15].mxu1  ;;  %v1651_v36 = vpop.f32.mrb[11].mxu0 }
 0x4ee   :  { %1852 = vmatprep.mubr.f32.mxu1 %v1574_v34 }
 0x4ef   :  { %1853 = vmatmul.mubr.f32.vlgmr.msra.gmra.mrb[18].mxu1 %v1572_v31 }
 0x4f0   :  { %2837 = vmatpush3.bf16.msra.mxu1 %v2172_v37  ;;  %v1578_v39 = vpop.f32.mrb[16].mxu1  ;;  %v1655_v40 = vpop.f32.mrb[12].mxu0 }
 0x4f1   :  { %v1580_v26 = vpop.f32.mrb[17].mxu1  ;;  %v1657_v41 = vpop.f32.mrb[13].mxu0  ;;  %2839 = vmatprep.subr.bf16.mxu1 %v2181_v38 }
 0x4f2   :  { %1857 = vmatprep.mubr.f32.mxu1 %v1580_v26 }
 0x4f3   :  { %1858 = vmatmul.mubr.f32.gmra.mrb[20].mxu1 %v1578_v39 }
 0x4f4   :  { %2841 = vmatpush3.bf16.msra.mxu1 %v2173_v35  ;;  %1927 = vmatprep.mubr.f32.mxu1 %v1651_v36 }
 0x4f5   :  { %2843 = vmatprep.subr.bf16.mxu1 %v2182_v42 }
 0x4f8   :  { %2845 = vmatpush3.bf16.msra.mxu1 %v2174_v43 }
 0x4f9   :  { %2847 = vmatprep.subr.bf16.mxu1 %v2183_v32 }
 0x4fc   :  { %2849 = vmatpush3.bf16.msra.mxu1 %v2175_v44 }
 0x4fd   :  { %2851 = vmatprep.subr.bf16.mxu1 %v2184_v45 }
 0x500   :  { %2853 = vmatpush3.bf16.msra.mxu1 %v2176_v46 }
 0x501   :  { %2855 = vmatprep.subr.bf16.mxu1 %v2185_v47 }
 0x504   :  { %2857 = vmatpush3.bf16.msra.mxu1 %v2177_v48 }
 0x505   :  { %2859 = vmatprep.subr.bf16.mxu1 %v2186_v49 }
 0x508   :  { %2861 = vmatpush3.bf16.msra.mxu1 %v2178_v50 }
 0x509   :  { %2863 = vmatprep.subr.bf16.mxu1 %v2187_v51 }
 0x50c   :  { %2865 = vmatpush3.bf16.msra.mxu1 %v2179_v52 }
 0x50f   :  { %1928 = vmatmul.mubr.f32.vlgmr.msra.gmra.mrb[22].mxu1 %v1649_v33 }
 0x510   :  { %1932 = vmatprep.mubr.f32.mxu1 %v1657_v41 }
 0x513   :  { %1933 = vmatmul.mubr.f32.gmra.mrb[24].mxu1 %v1655_v40 }
 0x514   :  { %3657 = shalt.err (!%p3654_p6)
}
 0x515   :  { %s3658_s22 = scalar_lea.hbm %s4005_s10, 512 }
 0x516   :  { %p3659_p7 = scmp.ne.s32.totalorder %s4005_s10, %s3658_s22  ;;  %p3662_p8 = scmp.lt.u32.totalorder %s3658_s22, %s4005_s10 }
 0x518   :  { %p3664_p9 = pnand %p3662_p8, %p3659_p7 }
 0x51a   :  { %3667 = shalt.err (!%p3664_p9)
}
 0x51b   :  { %1953 = dma.vmem_to_hbm [thread:$0]  %s1948_s30, 512, %s4005_s10, [#allocation4], %s3708_s1, %s3708_s1, %s3709_s18  }
 0x51c   :  { %s3721_s28 = smov [#allocation18]  }
 0x51d   :  { %s1959_s13 = sshll.u32 %s3721_s28, 4  ;;  %s1960_s13 = int_to_ptr.vmem [resolvable:$true] %s1959_s13 }
 0x51e   :  { %s3668_s10 = scalar_lea.vmem %s1960_s13, 256  ;;  %p3673_p11 = scmp.lt.s32.totalorder %s1960_s13, %s1960_s13 }
 0x51f   :  { %p3669_p10 = scmp.ne.s32.totalorder %s1960_s13, %s3668_s10  ;;  %p3674_p12 = scmp.lt.s32.totalorder %s3668_s10, %s3668_s10 }
 0x521   :  { %p3675_p13 = por %p3674_p12, %p3673_p11 }
 0x523   :  { %p3676_p0 = pnand %p3675_p13, %p3669_p10 }
 0x5c2   :  { %v2240_v53 = vpop.f32.mrb[18].mxu1 }
 0x5c3   :  { %v2241_v54 = vpop.f32.mrb[19].mxu1 }
 0x5c4   :  { %v2242_v55 = vadd.f32 %v2241_v54, %v2240_v53 }
 0x5c6   :  { %v2243_v23 = vpop.f32.mrb[20].mxu1 }
 0x5c7   :  { %v2244_v56 = vpop.f32.mrb[21].mxu1 }
 0x5c8   :  { %v2245_v57 = vadd.f32 %v2244_v56, %v2243_v23 }
 0x5e2   :  { %v2278_v58 = vpop.f32.mrb[22].mxu1 }
 0x5e3   :  { %v2279_v59 = vpop.f32.mrb[23].mxu1 }
 0x5e4   :  { %v2280_v60 = vadd.f32 %v2279_v59, %v2278_v58 }
 0x5e6   :  { %v1930_v61 = vadd.f32 %v2280_v60, %v2242_v55  ;;  %v2281_v62 = vpop.f32.mrb[24].mxu1 }
 0x5e7   :  { %v2282_v63 = vpop.f32.mrb[25].mxu1 }
 0x5e8   :  { %v1938_v0 = vmax.f32 %v1930_v61, 0.0  ;;  %v2283_v1 = vadd.f32 %v2282_v63, %v2281_v62 }
 0x5ea   :  { %1940 = vst [vmem:[#allocation18] sm:$0xff] %v1938_v0  ;;  %v1935_v2 = vadd.f32 %v2283_v1, %v2245_v57 }
 0x5ec   :  { %v1939_v3 = vmax.f32 %v1935_v2, 0.0 }
 0x5ee   :  { %1941 = vst [vmem:[#allocation18 + $0x8] sm:$0xff] %v1939_v3 }
 0x5ef   :  { %3679 = shalt.err (!%p3676_p0)
}
 0x5f0   :  { %s3680_s14 = scalar_lea.hbm %s4006_s11, 256 }
 0x5f1   :  { %p3681_p1 = scmp.ne.s32.totalorder %s4006_s11, %s3680_s14  ;;  %p3684_p2 = scmp.lt.u32.totalorder %s3680_s14, %s4006_s11 }
 0x5f3   :  { %p3686_p3 = pnand %p3684_p2, %p3681_p1 }
 0x5f5   :  { %3689 = shalt.err (!%p3686_p3)
}
 0x5f6   :  { %1965 = dma.vmem_to_hbm [thread:$0]  %s1960_s13, 256, %s4006_s11, [#allocation19], %s3714_s0, %s3714_s0, %s3715_s17  }
 0x5f7   :  { %3700 = dma.done.wait [#allocation4], 512  }
 0x5f8   :  { %3701 = vsyncadd [#allocation4], 4294966784 }
 0x5f9   :  { %3702 = dma.done.wait [#allocation19], 256  }
 0x5fa   :  { %3703 = vsyncadd [#allocation19], 4294967040 }
 0x5fb   :  { %1972 = vsyncpa [#allocation3], 1 }
 0x5fc   :  { %1973 = vsyncpa [#allocation6], 1 }
 0x5fd   :  { %1974 = vsyncpa [#allocation9], 1 }
 0x5fe   :  { %1975 = vsyncpa [#allocation12], 1 }
 0x5ff   :  { %1976 = vsyncpa [#allocation15], 1 }
 0x600   :  { %1977 = vsyncpa [#allocation4], 1 }
 0x601   :  { %1978 = vsyncpa [#allocation19], 1 }

</bundles_post_ra>
